<compile_context>
chip_gen: v7x
topology: tpu7x:2x2x1
jax: 0.10.0
libtpu: 0.0.40
codegen_flags: <defaults>
</compile_context>

<pallas_src>
import functools

import jax
import jax.numpy as jnp
from jax.experimental import pallas as pl
from jax.experimental.pallas import tpu as pltpu

# ---------------- problem sizes (small, consistent with the module) ----------
B = 2            # batch
NF = 8           # num_features (spatial locations from the encoder)
ENC = 32         # encoder_dim
DEC = 32         # decoder_dim
ATT = 32         # attention_dim
EMB = 32         # embed_size
VOCAB = 128      # vocab_size
T_CAP = 9        # caption length  -> seq_length = T_CAP - 1 = 8
SEQ = T_CAP - 1


# ---------------- Pallas kernel ----------------------------------------------
def decoder_kernel(features_ref, emb_gates_ref,
                   UwT_ref, Ub_ref,
                   whfT_ref, Wb_ref, hhb_ref,
                   Aw_ref, Ab_ref,
                   ihctxT_ref,
                   fwT_ref, fb_ref,
                   inithT_ref, inith_b_ref, initcT_ref, initc_b_ref,
                   preds_ref, alphas_ref):
    feats = features_ref[...]                        # (B, NF, ENC)
    b, nf, enc = feats.shape

    # --- init_hidden_state (once) --------------------------------------------
    mean_f = jnp.mean(feats, axis=1)                 # (B, ENC)
    h = (jnp.dot(mean_f, inithT_ref[...], preferred_element_type=jnp.float32)
         + inith_b_ref[...])                         # (B, DEC)
    c = (jnp.dot(mean_f, initcT_ref[...], preferred_element_type=jnp.float32)
         + initc_b_ref[...])                         # (B, DEC)

    # --- loop-invariant attention projection U(features) ---------------------
    u_hs = (jnp.dot(feats.reshape(b * nf, enc), UwT_ref[...],
                    preferred_element_type=jnp.float32)
            + Ub_ref[...])                           # (B*NF, ATT)
    att = u_hs.shape[-1]
    u_hs = u_hs.reshape(b, nf, att)                  # (B, NF, ATT)

    # --- hoist weight / constant loads out of the unrolled loop --------------
    whfT = whfT_ref[...]                             # (DEC, 4*DEC + ATT)
    wb = Wb_ref[...]                                 # (1, ATT)
    hhb = hhb_ref[...]                               # (1, 4*DEC)
    aw = Aw_ref[...]                                 # (1, ATT)
    ab = Ab_ref[...]                                 # (1, 1)
    ihctxT = ihctxT_ref[...]                         # (ENC, 4*DEC)
    fwT = fwT_ref[...]                               # (DEC, VOCAB)
    fb = fb_ref[...]                                 # (1, VOCAB)
    emb_gates = emb_gates_ref[...]                   # (SEQ*B, 4*DEC)

    d = h.shape[-1]
    preds_steps = []
    alpha_steps = []

    for s in range(SEQ):                             # static unroll, SEQ = 8
        # fused h projection: [LSTM hh gates | attention W], lane-aligned slices
        h_proj = jnp.dot(h, whfT, preferred_element_type=jnp.float32)  # (B, 4d+ATT)
        h_gates = h_proj[:, :4 * d] + hhb            # (B, 4*DEC)
        w_ah = h_proj[:, 4 * d:] + wb                # (B, ATT)

        # --- Attention -------------------------------------------------------
        combined = jnp.tanh(u_hs + w_ah[:, None, :])                 # (B, NF, ATT)
        scores = jnp.sum(combined * aw[None, :, :], axis=-1) + ab    # (B, NF)
        scores = scores - jnp.max(scores, axis=1, keepdims=True)
        e = jnp.exp(scores)
        alpha = e * pl.reciprocal(jnp.sum(e, axis=1, keepdims=True),
                                  approx=True)                        # softmax dim=1
        context = jnp.sum(feats * alpha[:, :, None], axis=1)          # (B, ENC)

        # --- LSTMCell (gate order i, f, g, o) ----------------------------------
        gates = (emb_gates[s * b:(s + 1) * b, :]
                 + jnp.dot(context, ihctxT, preferred_element_type=jnp.float32)
                 + h_gates)                                            # (B, 4*DEC)
        i_g = jax.nn.sigmoid(gates[:, 0 * d:1 * d])
        f_g = jax.nn.sigmoid(gates[:, 1 * d:2 * d])
        g_g = jnp.tanh(gates[:, 2 * d:3 * d])
        o_g = jax.nn.sigmoid(gates[:, 3 * d:4 * d])
        c = f_g * c + i_g * g_g
        h = o_g * jnp.tanh(c)

        # --- output projection (dropout = identity) ----------------------------
        preds_steps.append(jnp.dot(h, fwT, preferred_element_type=jnp.float32) + fb)
        alpha_steps.append(alpha)

    # dense one-shot stores
    preds_ref[...] = jnp.concatenate(preds_steps, axis=0)    # (SEQ*B, VOCAB)
    alphas_ref[...] = jnp.concatenate(alpha_steps, axis=0)   # (SEQ*B, NF)


# ---------------- wrapper ------------------------------------------------------
@jax.jit
def decoder_forward(features, captions, params):
    # glue (plain JAX): embedding lookup, weight pre-transposes / splits / fusion
    embeds = params["emb"][captions]                         # (B, T_CAP, EMB)
    embeds_t = jnp.transpose(embeds, (1, 0, 2))[:SEQ]        # (SEQ, B, EMB)

    ih_emb = params["ihw"][:, :EMB]                          # (4*DEC, EMB)
    ih_ctx = params["ihw"][:, EMB:]                          # (4*DEC, ENC)
    # embedding contribution to the gates for ALL timesteps, one matmul
    emb_gates = (embeds_t.reshape(SEQ * B, EMB) @ ih_emb.T
                 + params["ihb"])                            # (SEQ*B, 4*DEC)

    # fused h-projection weight: [hh gates | attention W], pre-transposed
    whfT = jnp.concatenate([params["hhw"].T, params["Ww"].T], axis=1)  # (DEC, 4*DEC+ATT)

    weight_args = [
        params["Uw"].T, params["Ub"],
        whfT, params["Wb"], params["hhb"],
        params["Aw"], params["Ab"],
        ih_ctx.T,
        params["fw"].T, params["fb"],
        params["inith_w"].T, params["inith_b"],
        params["initc_w"].T, params["initc_b"],
    ]

    preds_flat, alphas_flat = pl.pallas_call(
        decoder_kernel,
        out_shape=(jax.ShapeDtypeStruct((SEQ * B, VOCAB), jnp.float32),
                   jax.ShapeDtypeStruct((SEQ * B, NF), jnp.float32)),
    )(features, emb_gates, *weight_args)

    preds = jnp.transpose(preds_flat.reshape(SEQ, B, VOCAB), (1, 0, 2))   # (B, SEQ, VOCAB)
    alphas = jnp.transpose(alphas_flat.reshape(SEQ, B, NF), (1, 0, 2))    # (B, SEQ, NF)
    return preds, alphas


# ---------------- pure-JAX reference (for correctness check) -------------------
def ref_forward(features, captions, p):
    emb = p["emb"][captions]
    mean_f = features.mean(axis=1)
    h = mean_f @ p["inith_w"].T + p["inith_b"][0]
    c = mean_f @ p["initc_w"].T + p["initc_b"][0]
    preds, alphas = [], []
    for s in range(SEQ):
        u = features @ p["Uw"].T + p["Ub"][0]
        w = h @ p["Ww"].T + p["Wb"][0]
        comb = jnp.tanh(u + w[:, None, :])
        sc = (comb @ p["Aw"].T)[..., 0] + p["Ab"][0, 0]
        alpha = jax.nn.softmax(sc, axis=1)
        ctx = (features * alpha[:, :, None]).sum(axis=1)
        x = jnp.concatenate([emb[:, s], ctx], axis=1)
        gates = x @ p["ihw"].T + p["ihb"][0] + h @ p["hhw"].T + p["hhb"][0]
        i = jax.nn.sigmoid(gates[:, :DEC])
        f = jax.nn.sigmoid(gates[:, DEC:2 * DEC])
        g = jnp.tanh(gates[:, 2 * DEC:3 * DEC])
        o = jax.nn.sigmoid(gates[:, 3 * DEC:])
        c = f * c + i * g
        h = o * jnp.tanh(c)
        preds.append(h @ p["fw"].T + p["fb"][0])
        alphas.append(alpha)
    return jnp.stack(preds, axis=1), jnp.stack(alphas, axis=1)


# ---------------- parameter construction ---------------------------------------
def make_params(key):
    ks = jax.random.split(key, 20)
    n = lambda k, shape: (0.1 * jax.random.normal(k, shape)).astype(jnp.float32)
    return {
        "emb":     n(ks[0], (VOCAB, EMB)),
        # Attention
        "Uw": n(ks[1], (ATT, ENC)),  "Ub": n(ks[2], (1, ATT)),
        "Ww": n(ks[3], (ATT, DEC)),  "Wb": n(ks[4], (1, ATT)),
        "Aw": n(ks[5], (1, ATT)),    "Ab": n(ks[6], (1, 1)),
        # LSTMCell (PyTorch gate order: i, f, g, o)
        "ihw": n(ks[7], (4 * DEC, EMB + ENC)), "ihb": n(ks[8], (1, 4 * DEC)),
        "hhw": n(ks[9], (4 * DEC, DEC)),       "hhb": n(ks[10], (1, 4 * DEC)),
        # output projection
        "fw": n(ks[11], (VOCAB, DEC)), "fb": n(ks[12], (1, VOCAB)),
        # init_h / init_c
        "inith_w": n(ks[13], (DEC, ENC)), "inith_b": n(ks[14], (1, DEC)),
        "initc_w": n(ks[15], (DEC, ENC)), "initc_b": n(ks[16], (1, DEC)),
    }


if __name__ == "__main__":
    key = jax.random.PRNGKey(0)
    kp, kf, kc = jax.random.split(key, 3)
    params = make_params(kp)
    features = jax.random.normal(kf, (B, NF, ENC), dtype=jnp.float32)
    captions = jax.random.randint(kc, (B, T_CAP), 0, VOCAB, dtype=jnp.int32)

    preds, alphas = decoder_forward(features, captions, params)
    jax.block_until_ready((preds, alphas))

    preds_ref, alphas_ref = ref_forward(features, captions, params)
    assert preds.shape == (B, SEQ, VOCAB) and alphas.shape == (B, SEQ, NF)
    # tolerance slightly loosened for pl.reciprocal(approx=True) in the softmax
    assert jnp.allclose(preds, preds_ref, rtol=2e-3, atol=2e-3)
    assert jnp.allclose(alphas, alphas_ref, rtol=2e-3, atol=2e-3)
    print("KERNEL_OK")
</pallas_src>

<mosaic_0001>
module attributes {stable_mosaic.version = 11 : i64} {
  func.func @decoder_kernel(%arg0: memref<2x8x32xf32, #tpu.memory_space<vmem>>, %arg1: memref<16x128xf32, #tpu.memory_space<vmem>>, %arg2: memref<32x32xf32, #tpu.memory_space<vmem>>, %arg3: memref<1x32xf32, #tpu.memory_space<vmem>>, %arg4: memref<32x160xf32, #tpu.memory_space<vmem>>, %arg5: memref<1x32xf32, #tpu.memory_space<vmem>>, %arg6: memref<1x128xf32, #tpu.memory_space<vmem>>, %arg7: memref<1x32xf32, #tpu.memory_space<vmem>>, %arg8: memref<1x1xf32, #tpu.memory_space<vmem>>, %arg9: memref<32x128xf32, #tpu.memory_space<vmem>>, %arg10: memref<32x128xf32, #tpu.memory_space<vmem>>, %arg11: memref<1x128xf32, #tpu.memory_space<vmem>>, %arg12: memref<32x32xf32, #tpu.memory_space<vmem>>, %arg13: memref<1x32xf32, #tpu.memory_space<vmem>>, %arg14: memref<32x32xf32, #tpu.memory_space<vmem>>, %arg15: memref<1x32xf32, #tpu.memory_space<vmem>>, %arg16: memref<16x128xf32, #tpu.memory_space<vmem>>, %arg17: memref<16x8xf32, #tpu.memory_space<vmem>>) attributes {dimension_semantics = [], scalar_prefetch = 0 : i64, scratch_operands = 0 : i64, tpu.core_type = #tpu.core_type<tc>} {
    %c0 = arith.constant 0 : index
    %c0_0 = arith.constant 0 : index
    %c0_1 = arith.constant 0 : index
    %0 = vector.load %arg0[%c0, %c0_0, %c0_1] : memref<2x8x32xf32, #tpu.memory_space<vmem>>, vector<2x8x32xf32>
    %cst = arith.constant dense<0.000000e+00> : vector<2x32xf32>
    %1 = vector.multi_reduction <add>, %0, %cst [1] : vector<2x8x32xf32> to vector<2x32xf32>
    %cst_2 = arith.constant 8.000000e+00 : f32
    %2 = vector.broadcast %cst_2 : f32 to vector<2x32xf32>
    %3 = arith.divf %1, %2 : vector<2x32xf32>
    %c0_3 = arith.constant 0 : index
    %c0_4 = arith.constant 0 : index
    %4 = vector.load %arg12[%c0_3, %c0_4] : memref<32x32xf32, #tpu.memory_space<vmem>>, vector<32x32xf32>
    %cst_5 = arith.constant dense<0.000000e+00> : vector<2x32xf32>
    %5 = tpu.matmul %3, %4, %cst_5 {dimension_numbers = #tpu.dot_dimension_numbers<[1], [0], [0], [1], [0, 0, 1, 1], [], []>} : vector<2x32xf32>, vector<32x32xf32>, vector<2x32xf32> -> vector<2x32xf32>
    %c0_6 = arith.constant 0 : index
    %c0_7 = arith.constant 0 : index
    %6 = vector.load %arg13[%c0_6, %c0_7] : memref<1x32xf32, #tpu.memory_space<vmem>>, vector<1x32xf32>
    %7 = vector.broadcast %6 : vector<1x32xf32> to vector<2x32xf32>
    %8 = arith.addf %5, %7 : vector<2x32xf32>
    %c0_8 = arith.constant 0 : index
    %c0_9 = arith.constant 0 : index
    %9 = vector.load %arg14[%c0_8, %c0_9] : memref<32x32xf32, #tpu.memory_space<vmem>>, vector<32x32xf32>
    %cst_10 = arith.constant dense<0.000000e+00> : vector<2x32xf32>
    %10 = tpu.matmul %3, %9, %cst_10 {dimension_numbers = #tpu.dot_dimension_numbers<[1], [0], [0], [1], [0, 0, 1, 1], [], []>} : vector<2x32xf32>, vector<32x32xf32>, vector<2x32xf32> -> vector<2x32xf32>
    %c0_11 = arith.constant 0 : index
    %c0_12 = arith.constant 0 : index
    %11 = vector.load %arg15[%c0_11, %c0_12] : memref<1x32xf32, #tpu.memory_space<vmem>>, vector<1x32xf32>
    %12 = vector.broadcast %11 : vector<1x32xf32> to vector<2x32xf32>
    %13 = arith.addf %10, %12 : vector<2x32xf32>
    %14 = vector.shape_cast %0 : vector<2x8x32xf32> to vector<16x32xf32>
    %c0_13 = arith.constant 0 : index
    %c0_14 = arith.constant 0 : index
    %15 = vector.load %arg2[%c0_13, %c0_14] : memref<32x32xf32, #tpu.memory_space<vmem>>, vector<32x32xf32>
    %cst_15 = arith.constant dense<0.000000e+00> : vector<16x32xf32>
    %16 = tpu.matmul %14, %15, %cst_15 {dimension_numbers = #tpu.dot_dimension_numbers<[1], [0], [0], [1], [0, 0, 1, 1], [], []>} : vector<16x32xf32>, vector<32x32xf32>, vector<16x32xf32> -> vector<16x32xf32>
    %c0_16 = arith.constant 0 : index
    %c0_17 = arith.constant 0 : index
    %17 = vector.load %arg3[%c0_16, %c0_17] : memref<1x32xf32, #tpu.memory_space<vmem>>, vector<1x32xf32>
    %18 = vector.broadcast %17 : vector<1x32xf32> to vector<16x32xf32>
    %19 = arith.addf %16, %18 : vector<16x32xf32>
    %20 = vector.shape_cast %19 : vector<16x32xf32> to vector<2x8x32xf32>
    %c0_18 = arith.constant 0 : index
    %c0_19 = arith.constant 0 : index
    %21 = vector.load %arg4[%c0_18, %c0_19] : memref<32x160xf32, #tpu.memory_space<vmem>>, vector<32x160xf32>
    %c0_20 = arith.constant 0 : index
    %c0_21 = arith.constant 0 : index
    %22 = vector.load %arg5[%c0_20, %c0_21] : memref<1x32xf32, #tpu.memory_space<vmem>>, vector<1x32xf32>
    %c0_22 = arith.constant 0 : index
    %c0_23 = arith.constant 0 : index
    %23 = vector.load %arg6[%c0_22, %c0_23] : memref<1x128xf32, #tpu.memory_space<vmem>>, vector<1x128xf32>
    %c0_24 = arith.constant 0 : index
    %c0_25 = arith.constant 0 : index
    %24 = vector.load %arg7[%c0_24, %c0_25] : memref<1x32xf32, #tpu.memory_space<vmem>>, vector<1x32xf32>
    %c0_26 = arith.constant 0 : index
    %c0_27 = arith.constant 0 : index
    %25 = vector.load %arg8[%c0_26, %c0_27] : memref<1x1xf32, #tpu.memory_space<vmem>>, vector<1x1xf32>
    %c0_28 = arith.constant 0 : index
    %c0_29 = arith.constant 0 : index
    %26 = vector.load %arg9[%c0_28, %c0_29] : memref<32x128xf32, #tpu.memory_space<vmem>>, vector<32x128xf32>
    %c0_30 = arith.constant 0 : index
    %c0_31 = arith.constant 0 : index
    %27 = vector.load %arg10[%c0_30, %c0_31] : memref<32x128xf32, #tpu.memory_space<vmem>>, vector<32x128xf32>
    %c0_32 = arith.constant 0 : index
    %c0_33 = arith.constant 0 : index
    %28 = vector.load %arg11[%c0_32, %c0_33] : memref<1x128xf32, #tpu.memory_space<vmem>>, vector<1x128xf32>
    %c0_34 = arith.constant 0 : index
    %c0_35 = arith.constant 0 : index
    %29 = vector.load %arg1[%c0_34, %c0_35] : memref<16x128xf32, #tpu.memory_space<vmem>>, vector<16x128xf32>
    %cst_36 = arith.constant dense<0.000000e+00> : vector<2x160xf32>
    %30 = tpu.matmul %8, %21, %cst_36 {dimension_numbers = #tpu.dot_dimension_numbers<[1], [0], [0], [1], [0, 0, 1, 1], [], []>} : vector<2x32xf32>, vector<32x160xf32>, vector<2x160xf32> -> vector<2x160xf32>
    %31 = vector.extract_strided_slice %30 {offsets = [0, 0], sizes = [2, 128], strides = [1, 1]} : vector<2x160xf32> to vector<2x128xf32>
    %32 = vector.broadcast %23 : vector<1x128xf32> to vector<2x128xf32>
    %33 = arith.addf %31, %32 : vector<2x128xf32>
    %34 = vector.extract_strided_slice %30 {offsets = [0, 128], sizes = [2, 32], strides = [1, 1]} : vector<2x160xf32> to vector<2x32xf32>
    %35 = vector.broadcast %22 : vector<1x32xf32> to vector<2x32xf32>
    %36 = arith.addf %34, %35 : vector<2x32xf32>
    %37 = vector.shape_cast %36 : vector<2x32xf32> to vector<2x1x32xf32>
    %38 = vector.broadcast %37 : vector<2x1x32xf32> to vector<2x8x32xf32>
    %39 = arith.addf %20, %38 : vector<2x8x32xf32>
    %40 = math.tanh %39 : vector<2x8x32xf32>
    %41 = vector.shape_cast %24 : vector<1x32xf32> to vector<1x1x32xf32>
    %42 = vector.broadcast %41 : vector<1x1x32xf32> to vector<2x8x32xf32>
    %43 = arith.mulf %40, %42 : vector<2x8x32xf32>
    %cst_37 = arith.constant dense<0.000000e+00> : vector<2x8xf32>
    %44 = vector.multi_reduction <add>, %43, %cst_37 [2] : vector<2x8x32xf32> to vector<2x8xf32>
    %45 = vector.broadcast %25 : vector<1x1xf32> to vector<2x8xf32>
    %46 = arith.addf %44, %45 : vector<2x8xf32>
    %cst_38 = arith.constant dense<0xFF800000> : vector<2xf32>
    %47 = vector.multi_reduction <maximumf>, %46, %cst_38 [1] : vector<2x8xf32> to vector<2xf32>
    %48 = vector.shape_cast %47 : vector<2xf32> to vector<2x1xf32>
    %49 = vector.broadcast %48 : vector<2x1xf32> to vector<2x8xf32>
    %50 = arith.subf %46, %49 : vector<2x8xf32>
    %51 = math.exp %50 : vector<2x8xf32>
    %cst_39 = arith.constant dense<0.000000e+00> : vector<2xf32>
    %52 = vector.multi_reduction <add>, %51, %cst_39 [1] : vector<2x8xf32> to vector<2xf32>
    %53 = vector.shape_cast %52 : vector<2xf32> to vector<2x1xf32>
    %54 = tpu.reciprocal %53 {approx = true} : vector<2x1xf32> -> vector<2x1xf32>
    %55 = vector.broadcast %54 : vector<2x1xf32> to vector<2x8xf32>
    %56 = arith.mulf %51, %55 : vector<2x8xf32>
    %57 = vector.shape_cast %56 : vector<2x8xf32> to vector<2x8x1xf32>
    %58 = vector.broadcast %57 : vector<2x8x1xf32> to vector<2x8x32xf32>
    %59 = arith.mulf %0, %58 : vector<2x8x32xf32>
    %cst_40 = arith.constant dense<0.000000e+00> : vector<2x32xf32>
    %60 = vector.multi_reduction <add>, %59, %cst_40 [1] : vector<2x8x32xf32> to vector<2x32xf32>
    %61 = vector.extract_strided_slice %29 {offsets = [0, 0], sizes = [2, 128], strides = [1, 1]} : vector<16x128xf32> to vector<2x128xf32>
    %cst_41 = arith.constant dense<0.000000e+00> : vector<2x128xf32>
    %62 = tpu.matmul %60, %26, %cst_41 {dimension_numbers = #tpu.dot_dimension_numbers<[1], [0], [0], [1], [0, 0, 1, 1], [], []>} : vector<2x32xf32>, vector<32x128xf32>, vector<2x128xf32> -> vector<2x128xf32>
    %63 = arith.addf %61, %62 : vector<2x128xf32>
    %64 = arith.addf %63, %33 : vector<2x128xf32>
    %65 = vector.extract_strided_slice %64 {offsets = [0, 0], sizes = [2, 32], strides = [1, 1]} : vector<2x128xf32> to vector<2x32xf32>
    %66 = arith.negf %65 : vector<2x32xf32>
    %67 = math.exp %66 : vector<2x32xf32>
    %cst_42 = arith.constant 1.000000e+00 : f32
    %68 = vector.broadcast %cst_42 : f32 to vector<2x32xf32>
    %69 = arith.addf %68, %67 : vector<2x32xf32>
    %70 = arith.divf %68, %69 : vector<2x32xf32>
    %71 = vector.extract_strided_slice %64 {offsets = [0, 32], sizes = [2, 32], strides = [1, 1]} : vector<2x128xf32> to vector<2x32xf32>
    %72 = arith.negf %71 : vector<2x32xf32>
    %73 = math.exp %72 : vector<2x32xf32>
    %cst_43 = arith.constant 1.000000e+00 : f32
    %74 = vector.broadcast %cst_43 : f32 to vector<2x32xf32>
    %75 = arith.addf %74, %73 : vector<2x32xf32>
    %76 = arith.divf %74, %75 : vector<2x32xf32>
    %77 = vector.extract_strided_slice %64 {offsets = [0, 64], sizes = [2, 32], strides = [1, 1]} : vector<2x128xf32> to vector<2x32xf32>
    %78 = math.tanh %77 : vector<2x32xf32>
    %79 = vector.extract_strided_slice %64 {offsets = [0, 96], sizes = [2, 32], strides = [1, 1]} : vector<2x128xf32> to vector<2x32xf32>
    %80 = arith.negf %79 : vector<2x32xf32>
    %81 = math.exp %80 : vector<2x32xf32>
    %cst_44 = arith.constant 1.000000e+00 : f32
    %82 = vector.broadcast %cst_44 : f32 to vector<2x32xf32>
    %83 = arith.addf %82, %81 : vector<2x32xf32>
    %84 = arith.divf %82, %83 : vector<2x32xf32>
    %85 = arith.mulf %76, %13 : vector<2x32xf32>
    %86 = arith.mulf %70, %78 : vector<2x32xf32>
    %87 = arith.addf %85, %86 : vector<2x32xf32>
    %88 = math.tanh %87 : vector<2x32xf32>
    %89 = arith.mulf %84, %88 : vector<2x32xf32>
    %cst_45 = arith.constant dense<0.000000e+00> : vector<2x128xf32>
    %90 = tpu.matmul %89, %27, %cst_45 {dimension_numbers = #tpu.dot_dimension_numbers<[1], [0], [0], [1], [0, 0, 1, 1], [], []>} : vector<2x32xf32>, vector<32x128xf32>, vector<2x128xf32> -> vector<2x128xf32>
    %91 = vector.broadcast %28 : vector<1x128xf32> to vector<2x128xf32>
    %92 = arith.addf %90, %91 : vector<2x128xf32>
    %cst_46 = arith.constant dense<0.000000e+00> : vector<2x160xf32>
    %93 = tpu.matmul %89, %21, %cst_46 {dimension_numbers = #tpu.dot_dimension_numbers<[1], [0], [0], [1], [0, 0, 1, 1], [], []>} : vector<2x32xf32>, vector<32x160xf32>, vector<2x160xf32> -> vector<2x160xf32>
    %94 = vector.extract_strided_slice %93 {offsets = [0, 0], sizes = [2, 128], strides = [1, 1]} : vector<2x160xf32> to vector<2x128xf32>
    %95 = vector.broadcast %23 : vector<1x128xf32> to vector<2x128xf32>
    %96 = arith.addf %94, %95 : vector<2x128xf32>
    %97 = vector.extract_strided_slice %93 {offsets = [0, 128], sizes = [2, 32], strides = [1, 1]} : vector<2x160xf32> to vector<2x32xf32>
    %98 = vector.broadcast %22 : vector<1x32xf32> to vector<2x32xf32>
    %99 = arith.addf %97, %98 : vector<2x32xf32>
    %100 = vector.shape_cast %99 : vector<2x32xf32> to vector<2x1x32xf32>
    %101 = vector.broadcast %100 : vector<2x1x32xf32> to vector<2x8x32xf32>
    %102 = arith.addf %20, %101 : vector<2x8x32xf32>
    %103 = math.tanh %102 : vector<2x8x32xf32>
    %104 = vector.shape_cast %24 : vector<1x32xf32> to vector<1x1x32xf32>
    %105 = vector.broadcast %104 : vector<1x1x32xf32> to vector<2x8x32xf32>
    %106 = arith.mulf %103, %105 : vector<2x8x32xf32>
    %cst_47 = arith.constant dense<0.000000e+00> : vector<2x8xf32>
    %107 = vector.multi_reduction <add>, %106, %cst_47 [2] : vector<2x8x32xf32> to vector<2x8xf32>
    %108 = vector.broadcast %25 : vector<1x1xf32> to vector<2x8xf32>
    %109 = arith.addf %107, %108 : vector<2x8xf32>
    %cst_48 = arith.constant dense<0xFF800000> : vector<2xf32>
    %110 = vector.multi_reduction <maximumf>, %109, %cst_48 [1] : vector<2x8xf32> to vector<2xf32>
    %111 = vector.shape_cast %110 : vector<2xf32> to vector<2x1xf32>
    %112 = vector.broadcast %111 : vector<2x1xf32> to vector<2x8xf32>
    %113 = arith.subf %109, %112 : vector<2x8xf32>
    %114 = math.exp %113 : vector<2x8xf32>
    %cst_49 = arith.constant dense<0.000000e+00> : vector<2xf32>
    %115 = vector.multi_reduction <add>, %114, %cst_49 [1] : vector<2x8xf32> to vector<2xf32>
    %116 = vector.shape_cast %115 : vector<2xf32> to vector<2x1xf32>
    %117 = tpu.reciprocal %116 {approx = true} : vector<2x1xf32> -> vector<2x1xf32>
    %118 = vector.broadcast %117 : vector<2x1xf32> to vector<2x8xf32>
    %119 = arith.mulf %114, %118 : vector<2x8xf32>
    %120 = vector.shape_cast %119 : vector<2x8xf32> to vector<2x8x1xf32>
    %121 = vector.broadcast %120 : vector<2x8x1xf32> to vector<2x8x32xf32>
    %122 = arith.mulf %0, %121 : vector<2x8x32xf32>
    %cst_50 = arith.constant dense<0.000000e+00> : vector<2x32xf32>
    %123 = vector.multi_reduction <add>, %122, %cst_50 [1] : vector<2x8x32xf32> to vector<2x32xf32>
    %124 = vector.extract_strided_slice %29 {offsets = [2, 0], sizes = [2, 128], strides = [1, 1]} : vector<16x128xf32> to vector<2x128xf32>
    %cst_51 = arith.constant dense<0.000000e+00> : vector<2x128xf32>
    %125 = tpu.matmul %123, %26, %cst_51 {dimension_numbers = #tpu.dot_dimension_numbers<[1], [0], [0], [1], [0, 0, 1, 1], [], []>} : vector<2x32xf32>, vector<32x128xf32>, vector<2x128xf32> -> vector<2x128xf32>
    %126 = arith.addf %124, %125 : vector<2x128xf32>
    %127 = arith.addf %126, %96 : vector<2x128xf32>
    %128 = vector.extract_strided_slice %127 {offsets = [0, 0], sizes = [2, 32], strides = [1, 1]} : vector<2x128xf32> to vector<2x32xf32>
    %129 = arith.negf %128 : vector<2x32xf32>
    %130 = math.exp %129 : vector<2x32xf32>
    %cst_52 = arith.constant 1.000000e+00 : f32
    %131 = vector.broadcast %cst_52 : f32 to vector<2x32xf32>
    %132 = arith.addf %131, %130 : vector<2x32xf32>
    %133 = arith.divf %131, %132 : vector<2x32xf32>
    %134 = vector.extract_strided_slice %127 {offsets = [0, 32], sizes = [2, 32], strides = [1, 1]} : vector<2x128xf32> to vector<2x32xf32>
    %135 = arith.negf %134 : vector<2x32xf32>
    %136 = math.exp %135 : vector<2x32xf32>
    %cst_53 = arith.constant 1.000000e+00 : f32
    %137 = vector.broadcast %cst_53 : f32 to vector<2x32xf32>
    %138 = arith.addf %137, %136 : vector<2x32xf32>
    %139 = arith.divf %137, %138 : vector<2x32xf32>
    %140 = vector.extract_strided_slice %127 {offsets = [0, 64], sizes = [2, 32], strides = [1, 1]} : vector<2x128xf32> to vector<2x32xf32>
    %141 = math.tanh %140 : vector<2x32xf32>
    %142 = vector.extract_strided_slice %127 {offsets = [0, 96], sizes = [2, 32], strides = [1, 1]} : vector<2x128xf32> to vector<2x32xf32>
    %143 = arith.negf %142 : vector<2x32xf32>
    %144 = math.exp %143 : vector<2x32xf32>
    %cst_54 = arith.constant 1.000000e+00 : f32
    %145 = vector.broadcast %cst_54 : f32 to vector<2x32xf32>
    %146 = arith.addf %145, %144 : vector<2x32xf32>
    %147 = arith.divf %145, %146 : vector<2x32xf32>
    %148 = arith.mulf %139, %87 : vector<2x32xf32>
    %149 = arith.mulf %133, %141 : vector<2x32xf32>
    %150 = arith.addf %148, %149 : vector<2x32xf32>
    %151 = math.tanh %150 : vector<2x32xf32>
    %152 = arith.mulf %147, %151 : vector<2x32xf32>
    %cst_55 = arith.constant dense<0.000000e+00> : vector<2x128xf32>
    %153 = tpu.matmul %152, %27, %cst_55 {dimension_numbers = #tpu.dot_dimension_numbers<[1], [0], [0], [1], [0, 0, 1, 1], [], []>} : vector<2x32xf32>, vector<32x128xf32>, vector<2x128xf32> -> vector<2x128xf32>
    %154 = vector.broadcast %28 : vector<1x128xf32> to vector<2x128xf32>
    %155 = arith.addf %153, %154 : vector<2x128xf32>
    %cst_56 = arith.constant dense<0.000000e+00> : vector<2x160xf32>
    %156 = tpu.matmul %152, %21, %cst_56 {dimension_numbers = #tpu.dot_dimension_numbers<[1], [0], [0], [1], [0, 0, 1, 1], [], []>} : vector<2x32xf32>, vector<32x160xf32>, vector<2x160xf32> -> vector<2x160xf32>
    %157 = vector.extract_strided_slice %156 {offsets = [0, 0], sizes = [2, 128], strides = [1, 1]} : vector<2x160xf32> to vector<2x128xf32>
    %158 = vector.broadcast %23 : vector<1x128xf32> to vector<2x128xf32>
    %159 = arith.addf %157, %158 : vector<2x128xf32>
    %160 = vector.extract_strided_slice %156 {offsets = [0, 128], sizes = [2, 32], strides = [1, 1]} : vector<2x160xf32> to vector<2x32xf32>
    %161 = vector.broadcast %22 : vector<1x32xf32> to vector<2x32xf32>
    %162 = arith.addf %160, %161 : vector<2x32xf32>
    %163 = vector.shape_cast %162 : vector<2x32xf32> to vector<2x1x32xf32>
    %164 = vector.broadcast %163 : vector<2x1x32xf32> to vector<2x8x32xf32>
    %165 = arith.addf %20, %164 : vector<2x8x32xf32>
    %166 = math.tanh %165 : vector<2x8x32xf32>
    %167 = vector.shape_cast %24 : vector<1x32xf32> to vector<1x1x32xf32>
    %168 = vector.broadcast %167 : vector<1x1x32xf32> to vector<2x8x32xf32>
    %169 = arith.mulf %166, %168 : vector<2x8x32xf32>
    %cst_57 = arith.constant dense<0.000000e+00> : vector<2x8xf32>
    %170 = vector.multi_reduction <add>, %169, %cst_57 [2] : vector<2x8x32xf32> to vector<2x8xf32>
    %171 = vector.broadcast %25 : vector<1x1xf32> to vector<2x8xf32>
    %172 = arith.addf %170, %171 : vector<2x8xf32>
    %cst_58 = arith.constant dense<0xFF800000> : vector<2xf32>
    %173 = vector.multi_reduction <maximumf>, %172, %cst_58 [1] : vector<2x8xf32> to vector<2xf32>
    %174 = vector.shape_cast %173 : vector<2xf32> to vector<2x1xf32>
    %175 = vector.broadcast %174 : vector<2x1xf32> to vector<2x8xf32>
    %176 = arith.subf %172, %175 : vector<2x8xf32>
    %177 = math.exp %176 : vector<2x8xf32>
    %cst_59 = arith.constant dense<0.000000e+00> : vector<2xf32>
    %178 = vector.multi_reduction <add>, %177, %cst_59 [1] : vector<2x8xf32> to vector<2xf32>
    %179 = vector.shape_cast %178 : vector<2xf32> to vector<2x1xf32>
    %180 = tpu.reciprocal %179 {approx = true} : vector<2x1xf32> -> vector<2x1xf32>
    %181 = vector.broadcast %180 : vector<2x1xf32> to vector<2x8xf32>
    %182 = arith.mulf %177, %181 : vector<2x8xf32>
    %183 = vector.shape_cast %182 : vector<2x8xf32> to vector<2x8x1xf32>
    %184 = vector.broadcast %183 : vector<2x8x1xf32> to vector<2x8x32xf32>
    %185 = arith.mulf %0, %184 : vector<2x8x32xf32>
    %cst_60 = arith.constant dense<0.000000e+00> : vector<2x32xf32>
    %186 = vector.multi_reduction <add>, %185, %cst_60 [1] : vector<2x8x32xf32> to vector<2x32xf32>
    %187 = vector.extract_strided_slice %29 {offsets = [4, 0], sizes = [2, 128], strides = [1, 1]} : vector<16x128xf32> to vector<2x128xf32>
    %cst_61 = arith.constant dense<0.000000e+00> : vector<2x128xf32>
    %188 = tpu.matmul %186, %26, %cst_61 {dimension_numbers = #tpu.dot_dimension_numbers<[1], [0], [0], [1], [0, 0, 1, 1], [], []>} : vector<2x32xf32>, vector<32x128xf32>, vector<2x128xf32> -> vector<2x128xf32>
    %189 = arith.addf %187, %188 : vector<2x128xf32>
    %190 = arith.addf %189, %159 : vector<2x128xf32>
    %191 = vector.extract_strided_slice %190 {offsets = [0, 0], sizes = [2, 32], strides = [1, 1]} : vector<2x128xf32> to vector<2x32xf32>
    %192 = arith.negf %191 : vector<2x32xf32>
    %193 = math.exp %192 : vector<2x32xf32>
    %cst_62 = arith.constant 1.000000e+00 : f32
    %194 = vector.broadcast %cst_62 : f32 to vector<2x32xf32>
    %195 = arith.addf %194, %193 : vector<2x32xf32>
    %196 = arith.divf %194, %195 : vector<2x32xf32>
    %197 = vector.extract_strided_slice %190 {offsets = [0, 32], sizes = [2, 32], strides = [1, 1]} : vector<2x128xf32> to vector<2x32xf32>
    %198 = arith.negf %197 : vector<2x32xf32>
    %199 = math.exp %198 : vector<2x32xf32>
    %cst_63 = arith.constant 1.000000e+00 : f32
    %200 = vector.broadcast %cst_63 : f32 to vector<2x32xf32>
    %201 = arith.addf %200, %199 : vector<2x32xf32>
    %202 = arith.divf %200, %201 : vector<2x32xf32>
    %203 = vector.extract_strided_slice %190 {offsets = [0, 64], sizes = [2, 32], strides = [1, 1]} : vector<2x128xf32> to vector<2x32xf32>
    %204 = math.tanh %203 : vector<2x32xf32>
    %205 = vector.extract_strided_slice %190 {offsets = [0, 96], sizes = [2, 32], strides = [1, 1]} : vector<2x128xf32> to vector<2x32xf32>
    %206 = arith.negf %205 : vector<2x32xf32>
    %207 = math.exp %206 : vector<2x32xf32>
    %cst_64 = arith.constant 1.000000e+00 : f32
    %208 = vector.broadcast %cst_64 : f32 to vector<2x32xf32>
    %209 = arith.addf %208, %207 : vector<2x32xf32>
    %210 = arith.divf %208, %209 : vector<2x32xf32>
    %211 = arith.mulf %202, %150 : vector<2x32xf32>
    %212 = arith.mulf %196, %204 : vector<2x32xf32>
    %213 = arith.addf %211, %212 : vector<2x32xf32>
    %214 = math.tanh %213 : vector<2x32xf32>
    %215 = arith.mulf %210, %214 : vector<2x32xf32>
    %cst_65 = arith.constant dense<0.000000e+00> : vector<2x128xf32>
    %216 = tpu.matmul %215, %27, %cst_65 {dimension_numbers = #tpu.dot_dimension_numbers<[1], [0], [0], [1], [0, 0, 1, 1], [], []>} : vector<2x32xf32>, vector<32x128xf32>, vector<2x128xf32> -> vector<2x128xf32>
    %217 = vector.broadcast %28 : vector<1x128xf32> to vector<2x128xf32>
    %218 = arith.addf %216, %217 : vector<2x128xf32>
    %cst_66 = arith.constant dense<0.000000e+00> : vector<2x160xf32>
    %219 = tpu.matmul %215, %21, %cst_66 {dimension_numbers = #tpu.dot_dimension_numbers<[1], [0], [0], [1], [0, 0, 1, 1], [], []>} : vector<2x32xf32>, vector<32x160xf32>, vector<2x160xf32> -> vector<2x160xf32>
    %220 = vector.extract_strided_slice %219 {offsets = [0, 0], sizes = [2, 128], strides = [1, 1]} : vector<2x160xf32> to vector<2x128xf32>
    %221 = vector.broadcast %23 : vector<1x128xf32> to vector<2x128xf32>
    %222 = arith.addf %220, %221 : vector<2x128xf32>
    %223 = vector.extract_strided_slice %219 {offsets = [0, 128], sizes = [2, 32], strides = [1, 1]} : vector<2x160xf32> to vector<2x32xf32>
    %224 = vector.broadcast %22 : vector<1x32xf32> to vector<2x32xf32>
    %225 = arith.addf %223, %224 : vector<2x32xf32>
    %226 = vector.shape_cast %225 : vector<2x32xf32> to vector<2x1x32xf32>
    %227 = vector.broadcast %226 : vector<2x1x32xf32> to vector<2x8x32xf32>
    %228 = arith.addf %20, %227 : vector<2x8x32xf32>
    %229 = math.tanh %228 : vector<2x8x32xf32>
    %230 = vector.shape_cast %24 : vector<1x32xf32> to vector<1x1x32xf32>
    %231 = vector.broadcast %230 : vector<1x1x32xf32> to vector<2x8x32xf32>
    %232 = arith.mulf %229, %231 : vector<2x8x32xf32>
    %cst_67 = arith.constant dense<0.000000e+00> : vector<2x8xf32>
    %233 = vector.multi_reduction <add>, %232, %cst_67 [2] : vector<2x8x32xf32> to vector<2x8xf32>
    %234 = vector.broadcast %25 : vector<1x1xf32> to vector<2x8xf32>
    %235 = arith.addf %233, %234 : vector<2x8xf32>
    %cst_68 = arith.constant dense<0xFF800000> : vector<2xf32>
    %236 = vector.multi_reduction <maximumf>, %235, %cst_68 [1] : vector<2x8xf32> to vector<2xf32>
    %237 = vector.shape_cast %236 : vector<2xf32> to vector<2x1xf32>
    %238 = vector.broadcast %237 : vector<2x1xf32> to vector<2x8xf32>
    %239 = arith.subf %235, %238 : vector<2x8xf32>
    %240 = math.exp %239 : vector<2x8xf32>
    %cst_69 = arith.constant dense<0.000000e+00> : vector<2xf32>
    %241 = vector.multi_reduction <add>, %240, %cst_69 [1] : vector<2x8xf32> to vector<2xf32>
    %242 = vector.shape_cast %241 : vector<2xf32> to vector<2x1xf32>
    %243 = tpu.reciprocal %242 {approx = true} : vector<2x1xf32> -> vector<2x1xf32>
    %244 = vector.broadcast %243 : vector<2x1xf32> to vector<2x8xf32>
    %245 = arith.mulf %240, %244 : vector<2x8xf32>
    %246 = vector.shape_cast %245 : vector<2x8xf32> to vector<2x8x1xf32>
    %247 = vector.broadcast %246 : vector<2x8x1xf32> to vector<2x8x32xf32>
    %248 = arith.mulf %0, %247 : vector<2x8x32xf32>
    %cst_70 = arith.constant dense<0.000000e+00> : vector<2x32xf32>
    %249 = vector.multi_reduction <add>, %248, %cst_70 [1] : vector<2x8x32xf32> to vector<2x32xf32>
    %250 = vector.extract_strided_slice %29 {offsets = [6, 0], sizes = [2, 128], strides = [1, 1]} : vector<16x128xf32> to vector<2x128xf32>
    %cst_71 = arith.constant dense<0.000000e+00> : vector<2x128xf32>
    %251 = tpu.matmul %249, %26, %cst_71 {dimension_numbers = #tpu.dot_dimension_numbers<[1], [0], [0], [1], [0, 0, 1, 1], [], []>} : vector<2x32xf32>, vector<32x128xf32>, vector<2x128xf32> -> vector<2x128xf32>
    %252 = arith.addf %250, %251 : vector<2x128xf32>
    %253 = arith.addf %252, %222 : vector<2x128xf32>
    %254 = vector.extract_strided_slice %253 {offsets = [0, 0], sizes = [2, 32], strides = [1, 1]} : vector<2x128xf32> to vector<2x32xf32>
    %255 = arith.negf %254 : vector<2x32xf32>
    %256 = math.exp %255 : vector<2x32xf32>
    %cst_72 = arith.constant 1.000000e+00 : f32
    %257 = vector.broadcast %cst_72 : f32 to vector<2x32xf32>
    %258 = arith.addf %257, %256 : vector<2x32xf32>
    %259 = arith.divf %257, %258 : vector<2x32xf32>
    %260 = vector.extract_strided_slice %253 {offsets = [0, 32], sizes = [2, 32], strides = [1, 1]} : vector<2x128xf32> to vector<2x32xf32>
    %261 = arith.negf %260 : vector<2x32xf32>
    %262 = math.exp %261 : vector<2x32xf32>
    %cst_73 = arith.constant 1.000000e+00 : f32
    %263 = vector.broadcast %cst_73 : f32 to vector<2x32xf32>
    %264 = arith.addf %263, %262 : vector<2x32xf32>
    %265 = arith.divf %263, %264 : vector<2x32xf32>
    %266 = vector.extract_strided_slice %253 {offsets = [0, 64], sizes = [2, 32], strides = [1, 1]} : vector<2x128xf32> to vector<2x32xf32>
    %267 = math.tanh %266 : vector<2x32xf32>
    %268 = vector.extract_strided_slice %253 {offsets = [0, 96], sizes = [2, 32], strides = [1, 1]} : vector<2x128xf32> to vector<2x32xf32>
    %269 = arith.negf %268 : vector<2x32xf32>
    %270 = math.exp %269 : vector<2x32xf32>
    %cst_74 = arith.constant 1.000000e+00 : f32
    %271 = vector.broadcast %cst_74 : f32 to vector<2x32xf32>
    %272 = arith.addf %271, %270 : vector<2x32xf32>
    %273 = arith.divf %271, %272 : vector<2x32xf32>
    %274 = arith.mulf %265, %213 : vector<2x32xf32>
    %275 = arith.mulf %259, %267 : vector<2x32xf32>
    %276 = arith.addf %274, %275 : vector<2x32xf32>
    %277 = math.tanh %276 : vector<2x32xf32>
    %278 = arith.mulf %273, %277 : vector<2x32xf32>
    %cst_75 = arith.constant dense<0.000000e+00> : vector<2x128xf32>
    %279 = tpu.matmul %278, %27, %cst_75 {dimension_numbers = #tpu.dot_dimension_numbers<[1], [0], [0], [1], [0, 0, 1, 1], [], []>} : vector<2x32xf32>, vector<32x128xf32>, vector<2x128xf32> -> vector<2x128xf32>
    %280 = vector.broadcast %28 : vector<1x128xf32> to vector<2x128xf32>
    %281 = arith.addf %279, %280 : vector<2x128xf32>
    %cst_76 = arith.constant dense<0.000000e+00> : vector<2x160xf32>
    %282 = tpu.matmul %278, %21, %cst_76 {dimension_numbers = #tpu.dot_dimension_numbers<[1], [0], [0], [1], [0, 0, 1, 1], [], []>} : vector<2x32xf32>, vector<32x160xf32>, vector<2x160xf32> -> vector<2x160xf32>
    %283 = vector.extract_strided_slice %282 {offsets = [0, 0], sizes = [2, 128], strides = [1, 1]} : vector<2x160xf32> to vector<2x128xf32>
    %284 = vector.broadcast %23 : vector<1x128xf32> to vector<2x128xf32>
    %285 = arith.addf %283, %284 : vector<2x128xf32>
    %286 = vector.extract_strided_slice %282 {offsets = [0, 128], sizes = [2, 32], strides = [1, 1]} : vector<2x160xf32> to vector<2x32xf32>
    %287 = vector.broadcast %22 : vector<1x32xf32> to vector<2x32xf32>
    %288 = arith.addf %286, %287 : vector<2x32xf32>
    %289 = vector.shape_cast %288 : vector<2x32xf32> to vector<2x1x32xf32>
    %290 = vector.broadcast %289 : vector<2x1x32xf32> to vector<2x8x32xf32>
    %291 = arith.addf %20, %290 : vector<2x8x32xf32>
    %292 = math.tanh %291 : vector<2x8x32xf32>
    %293 = vector.shape_cast %24 : vector<1x32xf32> to vector<1x1x32xf32>
    %294 = vector.broadcast %293 : vector<1x1x32xf32> to vector<2x8x32xf32>
    %295 = arith.mulf %292, %294 : vector<2x8x32xf32>
    %cst_77 = arith.constant dense<0.000000e+00> : vector<2x8xf32>
    %296 = vector.multi_reduction <add>, %295, %cst_77 [2] : vector<2x8x32xf32> to vector<2x8xf32>
    %297 = vector.broadcast %25 : vector<1x1xf32> to vector<2x8xf32>
    %298 = arith.addf %296, %297 : vector<2x8xf32>
    %cst_78 = arith.constant dense<0xFF800000> : vector<2xf32>
    %299 = vector.multi_reduction <maximumf>, %298, %cst_78 [1] : vector<2x8xf32> to vector<2xf32>
    %300 = vector.shape_cast %299 : vector<2xf32> to vector<2x1xf32>
    %301 = vector.broadcast %300 : vector<2x1xf32> to vector<2x8xf32>
    %302 = arith.subf %298, %301 : vector<2x8xf32>
    %303 = math.exp %302 : vector<2x8xf32>
    %cst_79 = arith.constant dense<0.000000e+00> : vector<2xf32>
    %304 = vector.multi_reduction <add>, %303, %cst_79 [1] : vector<2x8xf32> to vector<2xf32>
    %305 = vector.shape_cast %304 : vector<2xf32> to vector<2x1xf32>
    %306 = tpu.reciprocal %305 {approx = true} : vector<2x1xf32> -> vector<2x1xf32>
    %307 = vector.broadcast %306 : vector<2x1xf32> to vector<2x8xf32>
    %308 = arith.mulf %303, %307 : vector<2x8xf32>
    %309 = vector.shape_cast %308 : vector<2x8xf32> to vector<2x8x1xf32>
    %310 = vector.broadcast %309 : vector<2x8x1xf32> to vector<2x8x32xf32>
    %311 = arith.mulf %0, %310 : vector<2x8x32xf32>
    %cst_80 = arith.constant dense<0.000000e+00> : vector<2x32xf32>
    %312 = vector.multi_reduction <add>, %311, %cst_80 [1] : vector<2x8x32xf32> to vector<2x32xf32>
    %313 = vector.extract_strided_slice %29 {offsets = [8, 0], sizes = [2, 128], strides = [1, 1]} : vector<16x128xf32> to vector<2x128xf32>
    %cst_81 = arith.constant dense<0.000000e+00> : vector<2x128xf32>
    %314 = tpu.matmul %312, %26, %cst_81 {dimension_numbers = #tpu.dot_dimension_numbers<[1], [0], [0], [1], [0, 0, 1, 1], [], []>} : vector<2x32xf32>, vector<32x128xf32>, vector<2x128xf32> -> vector<2x128xf32>
    %315 = arith.addf %313, %314 : vector<2x128xf32>
    %316 = arith.addf %315, %285 : vector<2x128xf32>
    %317 = vector.extract_strided_slice %316 {offsets = [0, 0], sizes = [2, 32], strides = [1, 1]} : vector<2x128xf32> to vector<2x32xf32>
    %318 = arith.negf %317 : vector<2x32xf32>
    %319 = math.exp %318 : vector<2x32xf32>
    %cst_82 = arith.constant 1.000000e+00 : f32
    %320 = vector.broadcast %cst_82 : f32 to vector<2x32xf32>
    %321 = arith.addf %320, %319 : vector<2x32xf32>
    %322 = arith.divf %320, %321 : vector<2x32xf32>
    %323 = vector.extract_strided_slice %316 {offsets = [0, 32], sizes = [2, 32], strides = [1, 1]} : vector<2x128xf32> to vector<2x32xf32>
    %324 = arith.negf %323 : vector<2x32xf32>
    %325 = math.exp %324 : vector<2x32xf32>
    %cst_83 = arith.constant 1.000000e+00 : f32
    %326 = vector.broadcast %cst_83 : f32 to vector<2x32xf32>
    %327 = arith.addf %326, %325 : vector<2x32xf32>
    %328 = arith.divf %326, %327 : vector<2x32xf32>
    %329 = vector.extract_strided_slice %316 {offsets = [0, 64], sizes = [2, 32], strides = [1, 1]} : vector<2x128xf32> to vector<2x32xf32>
    %330 = math.tanh %329 : vector<2x32xf32>
    %331 = vector.extract_strided_slice %316 {offsets = [0, 96], sizes = [2, 32], strides = [1, 1]} : vector<2x128xf32> to vector<2x32xf32>
    %332 = arith.negf %331 : vector<2x32xf32>
    %333 = math.exp %332 : vector<2x32xf32>
    %cst_84 = arith.constant 1.000000e+00 : f32
    %334 = vector.broadcast %cst_84 : f32 to vector<2x32xf32>
    %335 = arith.addf %334, %333 : vector<2x32xf32>
    %336 = arith.divf %334, %335 : vector<2x32xf32>
    %337 = arith.mulf %328, %276 : vector<2x32xf32>
    %338 = arith.mulf %322, %330 : vector<2x32xf32>
    %339 = arith.addf %337, %338 : vector<2x32xf32>
    %340 = math.tanh %339 : vector<2x32xf32>
    %341 = arith.mulf %336, %340 : vector<2x32xf32>
    %cst_85 = arith.constant dense<0.000000e+00> : vector<2x128xf32>
    %342 = tpu.matmul %341, %27, %cst_85 {dimension_numbers = #tpu.dot_dimension_numbers<[1], [0], [0], [1], [0, 0, 1, 1], [], []>} : vector<2x32xf32>, vector<32x128xf32>, vector<2x128xf32> -> vector<2x128xf32>
    %343 = vector.broadcast %28 : vector<1x128xf32> to vector<2x128xf32>
    %344 = arith.addf %342, %343 : vector<2x128xf32>
    %cst_86 = arith.constant dense<0.000000e+00> : vector<2x160xf32>
    %345 = tpu.matmul %341, %21, %cst_86 {dimension_numbers = #tpu.dot_dimension_numbers<[1], [0], [0], [1], [0, 0, 1, 1], [], []>} : vector<2x32xf32>, vector<32x160xf32>, vector<2x160xf32> -> vector<2x160xf32>
    %346 = vector.extract_strided_slice %345 {offsets = [0, 0], sizes = [2, 128], strides = [1, 1]} : vector<2x160xf32> to vector<2x128xf32>
    %347 = vector.broadcast %23 : vector<1x128xf32> to vector<2x128xf32>
    %348 = arith.addf %346, %347 : vector<2x128xf32>
    %349 = vector.extract_strided_slice %345 {offsets = [0, 128], sizes = [2, 32], strides = [1, 1]} : vector<2x160xf32> to vector<2x32xf32>
    %350 = vector.broadcast %22 : vector<1x32xf32> to vector<2x32xf32>
    %351 = arith.addf %349, %350 : vector<2x32xf32>
    %352 = vector.shape_cast %351 : vector<2x32xf32> to vector<2x1x32xf32>
    %353 = vector.broadcast %352 : vector<2x1x32xf32> to vector<2x8x32xf32>
    %354 = arith.addf %20, %353 : vector<2x8x32xf32>
    %355 = math.tanh %354 : vector<2x8x32xf32>
    %356 = vector.shape_cast %24 : vector<1x32xf32> to vector<1x1x32xf32>
    %357 = vector.broadcast %356 : vector<1x1x32xf32> to vector<2x8x32xf32>
    %358 = arith.mulf %355, %357 : vector<2x8x32xf32>
    %cst_87 = arith.constant dense<0.000000e+00> : vector<2x8xf32>
    %359 = vector.multi_reduction <add>, %358, %cst_87 [2] : vector<2x8x32xf32> to vector<2x8xf32>
    %360 = vector.broadcast %25 : vector<1x1xf32> to vector<2x8xf32>
    %361 = arith.addf %359, %360 : vector<2x8xf32>
    %cst_88 = arith.constant dense<0xFF800000> : vector<2xf32>
    %362 = vector.multi_reduction <maximumf>, %361, %cst_88 [1] : vector<2x8xf32> to vector<2xf32>
    %363 = vector.shape_cast %362 : vector<2xf32> to vector<2x1xf32>
    %364 = vector.broadcast %363 : vector<2x1xf32> to vector<2x8xf32>
    %365 = arith.subf %361, %364 : vector<2x8xf32>
    %366 = math.exp %365 : vector<2x8xf32>
    %cst_89 = arith.constant dense<0.000000e+00> : vector<2xf32>
    %367 = vector.multi_reduction <add>, %366, %cst_89 [1] : vector<2x8xf32> to vector<2xf32>
    %368 = vector.shape_cast %367 : vector<2xf32> to vector<2x1xf32>
    %369 = tpu.reciprocal %368 {approx = true} : vector<2x1xf32> -> vector<2x1xf32>
    %370 = vector.broadcast %369 : vector<2x1xf32> to vector<2x8xf32>
    %371 = arith.mulf %366, %370 : vector<2x8xf32>
    %372 = vector.shape_cast %371 : vector<2x8xf32> to vector<2x8x1xf32>
    %373 = vector.broadcast %372 : vector<2x8x1xf32> to vector<2x8x32xf32>
    %374 = arith.mulf %0, %373 : vector<2x8x32xf32>
    %cst_90 = arith.constant dense<0.000000e+00> : vector<2x32xf32>
    %375 = vector.multi_reduction <add>, %374, %cst_90 [1] : vector<2x8x32xf32> to vector<2x32xf32>
    %376 = vector.extract_strided_slice %29 {offsets = [10, 0], sizes = [2, 128], strides = [1, 1]} : vector<16x128xf32> to vector<2x128xf32>
    %cst_91 = arith.constant dense<0.000000e+00> : vector<2x128xf32>
    %377 = tpu.matmul %375, %26, %cst_91 {dimension_numbers = #tpu.dot_dimension_numbers<[1], [0], [0], [1], [0, 0, 1, 1], [], []>} : vector<2x32xf32>, vector<32x128xf32>, vector<2x128xf32> -> vector<2x128xf32>
    %378 = arith.addf %376, %377 : vector<2x128xf32>
    %379 = arith.addf %378, %348 : vector<2x128xf32>
    %380 = vector.extract_strided_slice %379 {offsets = [0, 0], sizes = [2, 32], strides = [1, 1]} : vector<2x128xf32> to vector<2x32xf32>
    %381 = arith.negf %380 : vector<2x32xf32>
    %382 = math.exp %381 : vector<2x32xf32>
    %cst_92 = arith.constant 1.000000e+00 : f32
    %383 = vector.broadcast %cst_92 : f32 to vector<2x32xf32>
    %384 = arith.addf %383, %382 : vector<2x32xf32>
    %385 = arith.divf %383, %384 : vector<2x32xf32>
    %386 = vector.extract_strided_slice %379 {offsets = [0, 32], sizes = [2, 32], strides = [1, 1]} : vector<2x128xf32> to vector<2x32xf32>
    %387 = arith.negf %386 : vector<2x32xf32>
    %388 = math.exp %387 : vector<2x32xf32>
    %cst_93 = arith.constant 1.000000e+00 : f32
    %389 = vector.broadcast %cst_93 : f32 to vector<2x32xf32>
    %390 = arith.addf %389, %388 : vector<2x32xf32>
    %391 = arith.divf %389, %390 : vector<2x32xf32>
    %392 = vector.extract_strided_slice %379 {offsets = [0, 64], sizes = [2, 32], strides = [1, 1]} : vector<2x128xf32> to vector<2x32xf32>
    %393 = math.tanh %392 : vector<2x32xf32>
    %394 = vector.extract_strided_slice %379 {offsets = [0, 96], sizes = [2, 32], strides = [1, 1]} : vector<2x128xf32> to vector<2x32xf32>
    %395 = arith.negf %394 : vector<2x32xf32>
    %396 = math.exp %395 : vector<2x32xf32>
    %cst_94 = arith.constant 1.000000e+00 : f32
    %397 = vector.broadcast %cst_94 : f32 to vector<2x32xf32>
    %398 = arith.addf %397, %396 : vector<2x32xf32>
    %399 = arith.divf %397, %398 : vector<2x32xf32>
    %400 = arith.mulf %391, %339 : vector<2x32xf32>
    %401 = arith.mulf %385, %393 : vector<2x32xf32>
    %402 = arith.addf %400, %401 : vector<2x32xf32>
    %403 = math.tanh %402 : vector<2x32xf32>
    %404 = arith.mulf %399, %403 : vector<2x32xf32>
    %cst_95 = arith.constant dense<0.000000e+00> : vector<2x128xf32>
    %405 = tpu.matmul %404, %27, %cst_95 {dimension_numbers = #tpu.dot_dimension_numbers<[1], [0], [0], [1], [0, 0, 1, 1], [], []>} : vector<2x32xf32>, vector<32x128xf32>, vector<2x128xf32> -> vector<2x128xf32>
    %406 = vector.broadcast %28 : vector<1x128xf32> to vector<2x128xf32>
    %407 = arith.addf %405, %406 : vector<2x128xf32>
    %cst_96 = arith.constant dense<0.000000e+00> : vector<2x160xf32>
    %408 = tpu.matmul %404, %21, %cst_96 {dimension_numbers = #tpu.dot_dimension_numbers<[1], [0], [0], [1], [0, 0, 1, 1], [], []>} : vector<2x32xf32>, vector<32x160xf32>, vector<2x160xf32> -> vector<2x160xf32>
    %409 = vector.extract_strided_slice %408 {offsets = [0, 0], sizes = [2, 128], strides = [1, 1]} : vector<2x160xf32> to vector<2x128xf32>
    %410 = vector.broadcast %23 : vector<1x128xf32> to vector<2x128xf32>
    %411 = arith.addf %409, %410 : vector<2x128xf32>
    %412 = vector.extract_strided_slice %408 {offsets = [0, 128], sizes = [2, 32], strides = [1, 1]} : vector<2x160xf32> to vector<2x32xf32>
    %413 = vector.broadcast %22 : vector<1x32xf32> to vector<2x32xf32>
    %414 = arith.addf %412, %413 : vector<2x32xf32>
    %415 = vector.shape_cast %414 : vector<2x32xf32> to vector<2x1x32xf32>
    %416 = vector.broadcast %415 : vector<2x1x32xf32> to vector<2x8x32xf32>
    %417 = arith.addf %20, %416 : vector<2x8x32xf32>
    %418 = math.tanh %417 : vector<2x8x32xf32>
    %419 = vector.shape_cast %24 : vector<1x32xf32> to vector<1x1x32xf32>
    %420 = vector.broadcast %419 : vector<1x1x32xf32> to vector<2x8x32xf32>
    %421 = arith.mulf %418, %420 : vector<2x8x32xf32>
    %cst_97 = arith.constant dense<0.000000e+00> : vector<2x8xf32>
    %422 = vector.multi_reduction <add>, %421, %cst_97 [2] : vector<2x8x32xf32> to vector<2x8xf32>
    %423 = vector.broadcast %25 : vector<1x1xf32> to vector<2x8xf32>
    %424 = arith.addf %422, %423 : vector<2x8xf32>
    %cst_98 = arith.constant dense<0xFF800000> : vector<2xf32>
    %425 = vector.multi_reduction <maximumf>, %424, %cst_98 [1] : vector<2x8xf32> to vector<2xf32>
    %426 = vector.shape_cast %425 : vector<2xf32> to vector<2x1xf32>
    %427 = vector.broadcast %426 : vector<2x1xf32> to vector<2x8xf32>
    %428 = arith.subf %424, %427 : vector<2x8xf32>
    %429 = math.exp %428 : vector<2x8xf32>
    %cst_99 = arith.constant dense<0.000000e+00> : vector<2xf32>
    %430 = vector.multi_reduction <add>, %429, %cst_99 [1] : vector<2x8xf32> to vector<2xf32>
    %431 = vector.shape_cast %430 : vector<2xf32> to vector<2x1xf32>
    %432 = tpu.reciprocal %431 {approx = true} : vector<2x1xf32> -> vector<2x1xf32>
    %433 = vector.broadcast %432 : vector<2x1xf32> to vector<2x8xf32>
    %434 = arith.mulf %429, %433 : vector<2x8xf32>
    %435 = vector.shape_cast %434 : vector<2x8xf32> to vector<2x8x1xf32>
    %436 = vector.broadcast %435 : vector<2x8x1xf32> to vector<2x8x32xf32>
    %437 = arith.mulf %0, %436 : vector<2x8x32xf32>
    %cst_100 = arith.constant dense<0.000000e+00> : vector<2x32xf32>
    %438 = vector.multi_reduction <add>, %437, %cst_100 [1] : vector<2x8x32xf32> to vector<2x32xf32>
    %439 = vector.extract_strided_slice %29 {offsets = [12, 0], sizes = [2, 128], strides = [1, 1]} : vector<16x128xf32> to vector<2x128xf32>
    %cst_101 = arith.constant dense<0.000000e+00> : vector<2x128xf32>
    %440 = tpu.matmul %438, %26, %cst_101 {dimension_numbers = #tpu.dot_dimension_numbers<[1], [0], [0], [1], [0, 0, 1, 1], [], []>} : vector<2x32xf32>, vector<32x128xf32>, vector<2x128xf32> -> vector<2x128xf32>
    %441 = arith.addf %439, %440 : vector<2x128xf32>
    %442 = arith.addf %441, %411 : vector<2x128xf32>
    %443 = vector.extract_strided_slice %442 {offsets = [0, 0], sizes = [2, 32], strides = [1, 1]} : vector<2x128xf32> to vector<2x32xf32>
    %444 = arith.negf %443 : vector<2x32xf32>
    %445 = math.exp %444 : vector<2x32xf32>
    %cst_102 = arith.constant 1.000000e+00 : f32
    %446 = vector.broadcast %cst_102 : f32 to vector<2x32xf32>
    %447 = arith.addf %446, %445 : vector<2x32xf32>
    %448 = arith.divf %446, %447 : vector<2x32xf32>
    %449 = vector.extract_strided_slice %442 {offsets = [0, 32], sizes = [2, 32], strides = [1, 1]} : vector<2x128xf32> to vector<2x32xf32>
    %450 = arith.negf %449 : vector<2x32xf32>
    %451 = math.exp %450 : vector<2x32xf32>
    %cst_103 = arith.constant 1.000000e+00 : f32
    %452 = vector.broadcast %cst_103 : f32 to vector<2x32xf32>
    %453 = arith.addf %452, %451 : vector<2x32xf32>
    %454 = arith.divf %452, %453 : vector<2x32xf32>
    %455 = vector.extract_strided_slice %442 {offsets = [0, 64], sizes = [2, 32], strides = [1, 1]} : vector<2x128xf32> to vector<2x32xf32>
    %456 = math.tanh %455 : vector<2x32xf32>
    %457 = vector.extract_strided_slice %442 {offsets = [0, 96], sizes = [2, 32], strides = [1, 1]} : vector<2x128xf32> to vector<2x32xf32>
    %458 = arith.negf %457 : vector<2x32xf32>
    %459 = math.exp %458 : vector<2x32xf32>
    %cst_104 = arith.constant 1.000000e+00 : f32
    %460 = vector.broadcast %cst_104 : f32 to vector<2x32xf32>
    %461 = arith.addf %460, %459 : vector<2x32xf32>
    %462 = arith.divf %460, %461 : vector<2x32xf32>
    %463 = arith.mulf %454, %402 : vector<2x32xf32>
    %464 = arith.mulf %448, %456 : vector<2x32xf32>
    %465 = arith.addf %463, %464 : vector<2x32xf32>
    %466 = math.tanh %465 : vector<2x32xf32>
    %467 = arith.mulf %462, %466 : vector<2x32xf32>
    %cst_105 = arith.constant dense<0.000000e+00> : vector<2x128xf32>
    %468 = tpu.matmul %467, %27, %cst_105 {dimension_numbers = #tpu.dot_dimension_numbers<[1], [0], [0], [1], [0, 0, 1, 1], [], []>} : vector<2x32xf32>, vector<32x128xf32>, vector<2x128xf32> -> vector<2x128xf32>
    %469 = vector.broadcast %28 : vector<1x128xf32> to vector<2x128xf32>
    %470 = arith.addf %468, %469 : vector<2x128xf32>
    %cst_106 = arith.constant dense<0.000000e+00> : vector<2x160xf32>
    %471 = tpu.matmul %467, %21, %cst_106 {dimension_numbers = #tpu.dot_dimension_numbers<[1], [0], [0], [1], [0, 0, 1, 1], [], []>} : vector<2x32xf32>, vector<32x160xf32>, vector<2x160xf32> -> vector<2x160xf32>
    %472 = vector.extract_strided_slice %471 {offsets = [0, 0], sizes = [2, 128], strides = [1, 1]} : vector<2x160xf32> to vector<2x128xf32>
    %473 = vector.broadcast %23 : vector<1x128xf32> to vector<2x128xf32>
    %474 = arith.addf %472, %473 : vector<2x128xf32>
    %475 = vector.extract_strided_slice %471 {offsets = [0, 128], sizes = [2, 32], strides = [1, 1]} : vector<2x160xf32> to vector<2x32xf32>
    %476 = vector.broadcast %22 : vector<1x32xf32> to vector<2x32xf32>
    %477 = arith.addf %475, %476 : vector<2x32xf32>
    %478 = vector.shape_cast %477 : vector<2x32xf32> to vector<2x1x32xf32>
    %479 = vector.broadcast %478 : vector<2x1x32xf32> to vector<2x8x32xf32>
    %480 = arith.addf %20, %479 : vector<2x8x32xf32>
    %481 = math.tanh %480 : vector<2x8x32xf32>
    %482 = vector.shape_cast %24 : vector<1x32xf32> to vector<1x1x32xf32>
    %483 = vector.broadcast %482 : vector<1x1x32xf32> to vector<2x8x32xf32>
    %484 = arith.mulf %481, %483 : vector<2x8x32xf32>
    %cst_107 = arith.constant dense<0.000000e+00> : vector<2x8xf32>
    %485 = vector.multi_reduction <add>, %484, %cst_107 [2] : vector<2x8x32xf32> to vector<2x8xf32>
    %486 = vector.broadcast %25 : vector<1x1xf32> to vector<2x8xf32>
    %487 = arith.addf %485, %486 : vector<2x8xf32>
    %cst_108 = arith.constant dense<0xFF800000> : vector<2xf32>
    %488 = vector.multi_reduction <maximumf>, %487, %cst_108 [1] : vector<2x8xf32> to vector<2xf32>
    %489 = vector.shape_cast %488 : vector<2xf32> to vector<2x1xf32>
    %490 = vector.broadcast %489 : vector<2x1xf32> to vector<2x8xf32>
    %491 = arith.subf %487, %490 : vector<2x8xf32>
    %492 = math.exp %491 : vector<2x8xf32>
    %cst_109 = arith.constant dense<0.000000e+00> : vector<2xf32>
    %493 = vector.multi_reduction <add>, %492, %cst_109 [1] : vector<2x8xf32> to vector<2xf32>
    %494 = vector.shape_cast %493 : vector<2xf32> to vector<2x1xf32>
    %495 = tpu.reciprocal %494 {approx = true} : vector<2x1xf32> -> vector<2x1xf32>
    %496 = vector.broadcast %495 : vector<2x1xf32> to vector<2x8xf32>
    %497 = arith.mulf %492, %496 : vector<2x8xf32>
    %498 = vector.shape_cast %497 : vector<2x8xf32> to vector<2x8x1xf32>
    %499 = vector.broadcast %498 : vector<2x8x1xf32> to vector<2x8x32xf32>
    %500 = arith.mulf %0, %499 : vector<2x8x32xf32>
    %cst_110 = arith.constant dense<0.000000e+00> : vector<2x32xf32>
    %501 = vector.multi_reduction <add>, %500, %cst_110 [1] : vector<2x8x32xf32> to vector<2x32xf32>
    %502 = vector.extract_strided_slice %29 {offsets = [14, 0], sizes = [2, 128], strides = [1, 1]} : vector<16x128xf32> to vector<2x128xf32>
    %cst_111 = arith.constant dense<0.000000e+00> : vector<2x128xf32>
    %503 = tpu.matmul %501, %26, %cst_111 {dimension_numbers = #tpu.dot_dimension_numbers<[1], [0], [0], [1], [0, 0, 1, 1], [], []>} : vector<2x32xf32>, vector<32x128xf32>, vector<2x128xf32> -> vector<2x128xf32>
    %504 = arith.addf %502, %503 : vector<2x128xf32>
    %505 = arith.addf %504, %474 : vector<2x128xf32>
    %506 = vector.extract_strided_slice %505 {offsets = [0, 0], sizes = [2, 32], strides = [1, 1]} : vector<2x128xf32> to vector<2x32xf32>
    %507 = arith.negf %506 : vector<2x32xf32>
    %508 = math.exp %507 : vector<2x32xf32>
    %cst_112 = arith.constant 1.000000e+00 : f32
    %509 = vector.broadcast %cst_112 : f32 to vector<2x32xf32>
    %510 = arith.addf %509, %508 : vector<2x32xf32>
    %511 = arith.divf %509, %510 : vector<2x32xf32>
    %512 = vector.extract_strided_slice %505 {offsets = [0, 32], sizes = [2, 32], strides = [1, 1]} : vector<2x128xf32> to vector<2x32xf32>
    %513 = arith.negf %512 : vector<2x32xf32>
    %514 = math.exp %513 : vector<2x32xf32>
    %cst_113 = arith.constant 1.000000e+00 : f32
    %515 = vector.broadcast %cst_113 : f32 to vector<2x32xf32>
    %516 = arith.addf %515, %514 : vector<2x32xf32>
    %517 = arith.divf %515, %516 : vector<2x32xf32>
    %518 = vector.extract_strided_slice %505 {offsets = [0, 64], sizes = [2, 32], strides = [1, 1]} : vector<2x128xf32> to vector<2x32xf32>
    %519 = math.tanh %518 : vector<2x32xf32>
    %520 = vector.extract_strided_slice %505 {offsets = [0, 96], sizes = [2, 32], strides = [1, 1]} : vector<2x128xf32> to vector<2x32xf32>
    %521 = arith.negf %520 : vector<2x32xf32>
    %522 = math.exp %521 : vector<2x32xf32>
    %cst_114 = arith.constant 1.000000e+00 : f32
    %523 = vector.broadcast %cst_114 : f32 to vector<2x32xf32>
    %524 = arith.addf %523, %522 : vector<2x32xf32>
    %525 = arith.divf %523, %524 : vector<2x32xf32>
    %526 = arith.mulf %517, %465 : vector<2x32xf32>
    %527 = arith.mulf %511, %519 : vector<2x32xf32>
    %528 = arith.addf %526, %527 : vector<2x32xf32>
    %529 = math.tanh %528 : vector<2x32xf32>
    %530 = arith.mulf %525, %529 : vector<2x32xf32>
    %cst_115 = arith.constant dense<0.000000e+00> : vector<2x128xf32>
    %531 = tpu.matmul %530, %27, %cst_115 {dimension_numbers = #tpu.dot_dimension_numbers<[1], [0], [0], [1], [0, 0, 1, 1], [], []>} : vector<2x32xf32>, vector<32x128xf32>, vector<2x128xf32> -> vector<2x128xf32>
    %532 = vector.broadcast %28 : vector<1x128xf32> to vector<2x128xf32>
    %533 = arith.addf %531, %532 : vector<2x128xf32>
    %534 = tpu.concatenate %92, %155, %218, %281, %344, %407, %470, %533 in 0 : vector<2x128xf32>, vector<2x128xf32>, vector<2x128xf32>, vector<2x128xf32>, vector<2x128xf32>, vector<2x128xf32>, vector<2x128xf32>, vector<2x128xf32> -> vector<16x128xf32>
    %c0_116 = arith.constant 0 : index
    %c0_117 = arith.constant 0 : index
    %535 = vector.load %arg16[%c0_116, %c0_117] : memref<16x128xf32, #tpu.memory_space<vmem>>, vector<16x128xf32>
    tpu.vector_store %arg16[%c0_116, %c0_117], %534 {strides = array<i32>} : memref<16x128xf32, #tpu.memory_space<vmem>>, vector<16x128xf32>,
    %536 = tpu.concatenate %56, %119, %182, %245, %308, %371, %434, %497 in 0 : vector<2x8xf32>, vector<2x8xf32>, vector<2x8xf32>, vector<2x8xf32>, vector<2x8xf32>, vector<2x8xf32>, vector<2x8xf32>, vector<2x8xf32> -> vector<16x8xf32>
    %c0_118 = arith.constant 0 : index
    %c0_119 = arith.constant 0 : index
    %537 = vector.load %arg17[%c0_118, %c0_119] : memref<16x8xf32, #tpu.memory_space<vmem>>, vector<16x8xf32>
    tpu.vector_store %arg17[%c0_118, %c0_119], %536 {strides = array<i32>} : memref<16x8xf32, #tpu.memory_space<vmem>>, vector<16x8xf32>,
    return
  }
}

</mosaic_0001>

<bundles_post_ra>
// kernel: decoder_forward.1
= control target key start
LH: loop header
LB: loop body
LE: loop exit
PB: predicated region body
PF: predicated region fallthrough
CT: control target
= control target key end

     0   :  { %vm59_vm0 = vcmask 261120   ;;  %v4397_v0 = vmov 0.0|0.0   ;;  %vm4398_vm1 = vmmov 0   ;;  %v4399_v4 = vmov 0.0   ;;  %s5329_s12 = inlined_call_operand.vmem [shape: f32[32,32], index: 12, kind: input, shape index: {}]   ;;  %s5330_s0 = inlined_call_operand.vmem [shape: f32[2,8,32], index: 0, kind: input, shape index: {}]   ;;  %s5331_s14 = inlined_call_operand.vmem [shape: f32[32,32], index: 14, kind: input, shape index: {}]   ;;  %s5332_s4 = inlined_call_operand.vmem [shape: f32[32,160], index: 4, kind: input, shape index: {}]   ;;  %s5333_s2 = inlined_call_operand.vmem [shape: f32[32,32], index: 2, kind: input, shape index: {}]   ;;  %s5334_s13 = inlined_call_operand.vmem [shape: f32[1,32], index: 13, kind: input, shape index: {}]   ;;  %s5335_s8 = inlined_call_operand.<no memory space> [shape: f32[1,1], index: 8, kind: input, shape index: {}]   ;;  %s5336_s5 = inlined_call_operand.vmem [shape: f32[1,32], index: 5, kind: input, shape index: {}]   ;;  %s5337_s3 = inlined_call_operand.vmem [shape: f32[1,32], index: 3, kind: input, shape index: {}]   ;;  %s5338_s7 = inlined_call_operand.vmem [shape: f32[1,32], index: 7, kind: input, shape index: {}]   ;;  %s5339_s9 = inlined_call_operand.vmem [shape: f32[32,128], index: 9, kind: input, shape index: {}]   ;;  %s5340_s6 = inlined_call_operand.vmem [shape: f32[1,128], index: 6, kind: input, shape index: {}]   ;;  %s5341_s1 = inlined_call_operand.vmem [shape: f32[16,128], index: 1, kind: input, shape index: {}]   ;;  %s5342_s15 = inlined_call_operand.vmem [shape: f32[1,32], index: 15, kind: input, shape index: {}]   ;;  %s5343_s10 = inlined_call_operand.vmem [shape: f32[32,128], index: 10, kind: input, shape index: {}]   ;;  %s5344_s11 = inlined_call_operand.vmem [shape: f32[1,128], index: 11, kind: input, shape index: {}]   ;;  %s5345_s17 = inlined_call_operand.vmem [shape: f32[16,8], index: 17, kind: output, shape index: {1}]   ;;  %s5346_s16 = inlined_call_operand.vmem [shape: f32[16,128], index: 16, kind: output, shape index: {0}]  }
   0x1   :  { %5349 = sst [smem:[#allocation3_spill]] %s5329_s12  ;;  %4056 = vmatprep.subr.bf16.mxu0 %v4397_v0  ;;  %3855 = vmatprep.mubr.msk.f32.mxu0 %vm4398_vm1, %v4399_v4  ;;  %v164_v11 = vld [vmem:[%s5331_s14] sm:$0xff]  ;;  %v165_v12 = vld [vmem:[%s5331_s14 + $0x8] sm:$0xff]  ;;  %v166_v13 = vld [vmem:[%s5331_s14 + $0x10] sm:$0xff]  ;;  %vm90_vm2 = vcmask 1041409   ;;  %v4400_v59 = vmov 0   ;;  %v23_v60 = vstv %s5335_s8 }
   0x2   :  { %5350 = sst [smem:[#allocation4_spill]] %s5330_s0  ;;  %s5351_s26 = sld [smem:[#allocation3_spill]]  ;;  %4062 = vmatprep.subr.bf16.mxu1 %v4397_v0  ;;  %3866 = vmatprep.mubr.msk.f32.mxu1 %vm4398_vm1, %v4399_v4  ;;  %v4063_v17 = vpack.c.bf16 %v165_v12, %v164_v11  ;;  %v167_v18 = vld [vmem:[%s5331_s14 + $0x18] sm:$0xff]  ;;  %v338_v19 = vld [vmem:[%s5332_s4 + $0x8] sm:$0xff]  ;;  %v337_v31 = vld [vmem:[%s5332_s4] sm:$0xff]  ;;  %vm524_vm3 = vcmask 58368  }
   0x3   :  { %s5352_s20 = sld [smem:[#allocation4_spill]]  ;;  %v340_v20 = vld [vmem:[%s5332_s4 + $0x18] sm:$0xff]  ;;  %v4066_v23 = vpack.c.bf16 %v167_v18, %v166_v13  ;;  %v339_v32 = vld [vmem:[%s5332_s4 + $0x10] sm:$0xff]  ;;  %v342_v35 = vld [vmem:[%s5332_s4 + $0x28] sm:$0xff]  ;;  %4243 = vset.pattern.permute.xlu1 %v4400_v59  ;;  %4244 = vset.pattern.permute.xlu0 %v4400_v59  ;;  %24 = vst [vmem:[#allocation2] sm:$0x1] %v23_v60 }
   0x4   :  { %4064 = vmatpush3.bf16.msra.mxu1 %v4063_v17  ;;  %v4546_v24 = vpack.c.bf16 %v340_v20, %v338_v19  ;;  %v344_v36 = vld [vmem:[%s5332_s4 + $0x38] sm:$0xff]  ;;  %v4561_v39 = vpack.c.bf16 %v339_v32, %v337_v31  ;;  %v245_v42 = vld [vmem:[%s5333_s2] sm:$0xff]  ;;  %v246_v43 = vld [vmem:[%s5333_s2 + $0x8] sm:$0xff]  ;;  %v4401_v62 = vmov 1966171168   ;;  %vm3625_vm4 = vcmask 1043459  }
   0x5   :  { %4065 = vmatprep.subr.bf16.mxu1 %v4397_v0  ;;  %v4563_v40 = vpack.c.bf16 %v344_v36, %v342_v35  ;;  %v341_v44 = vld [vmem:[%s5332_s4 + $0x20] sm:$0xff]  ;;  %v4068_v45 = vpack.c.bf16 %v246_v43, %v245_v42  ;;  %v343_v46 = vld [vmem:[%s5332_s4 + $0x30] sm:$0xff]  ;;  %v248_v49 = vld [vmem:[%s5333_s2 + $0x18] sm:$0xff]  ;;  %v450_v63 = vunpack.c.l.s4 %v4401_v62  ;;  %vm3596_vm5 = vcmask 1041408  }
   0x6   :  { %v4585_v47 = vpack.c.bf16 %v343_v46, %v341_v44  ;;  %v247_v48 = vld [vmem:[%s5333_s2 + $0x10] sm:$0xff]  ;;  %v3707_v51 = vld [vmem:[%s5334_s13] ss:$0 sm:$0xff]  ;;  %s4403_s13 = smov 32   ;;  %vm3636_vm6 = vcmask 1045509   ;;  %vm3598_vm7 = vcmask 1043456  }
   0x7   :  { %v4072_v50 = vpack.c.bf16 %v248_v49, %v247_v48  ;;  %v3711_v12 = vld [vmem:[%s5337_s3] ss:$0 sm:$0xff]  ;;  %vm3647_vm8 = vcmask 1047559   ;;  %vm3600_vm9 = vcmask 1045504   ;;  %vm3696_vm10 = vcmask 64512  }
   0x8   :  { %v77_v1 = vld [vmem:[%s5351_s26] sm:$0xff]  ;;  %v78_v2 = vld [vmem:[%s5351_s26 + $0x8] sm:$0xff]  ;;  %v79_v3 = vld [vmem:[%s5351_s26 + $0x10] sm:$0xff]  ;;  %4067 = vmatpush3.bf16.msra.mxu1 %v4066_v23 }
   0x9   :  { %v4057_v5 = vpack.c.bf16 %v78_v2, %v77_v1  ;;  %v80_v6 = vld [vmem:[%s5351_s26 + $0x18] sm:$0xff]  ;;  %v4512_v7 = vld [vmem:[%s5352_s20] sm:$0xff]  ;;  %v4517_v8 = vld [vmem:[%s5352_s20 + $0x8] sm:$0xff]  ;;  %4077 = vmatprep.subr.bf16.mxu1 %v4546_v24  ;;  %v452_v1 = vlaneseq  ;;  %v451_v2 = vunpack.c.0.s8 %v450_v63  ;;  %s4402_s26 = smov 64  }
   0xa   :  { %v60_v9 = vsel %vm59_vm0, %v4512_v7, 0.0  ;;  %v67_v10 = vsel %vm59_vm0, %v4517_v8, 0.0  ;;  %v4060_v14 = vpack.c.bf16 %v80_v6, %v79_v3  ;;  %v3718_v61 = vld [vmem:[#allocation2] ss:$0 sm:$0xff] }
   0xb   :  { %4058 = vmatpush3.bf16.msra.mxu0 %v4057_v5  ;;  %v61_v15 = vrot.slane %v60_v9, 4  ;;  %v68_v16 = vrot.slane %v67_v10, 4  ;;  %505 = vperm.xlu1 %4243, %v3718_v61   ;;  %v453_v3 = vshrl.u32 %v452_v1, 7  ;;  %v4614_v5 = vld [vmem:[%s5336_s5] ss:$0 sm:$0xff]  ;;  %v513_v32 = vand.u32 127, %v452_v1 }
   0xc   :  { %4059 = vmatprep.subr.bf16.mxu0 %v4397_v0 }
   0xd   :  { %v62_v21 = vadd.f32 %v61_v15, %v60_v9  ;;  %v69_v22 = vadd.f32 %v68_v16, %v67_v10  ;;  %v4618_v9 = vsub.s32 %v451_v2, %v453_v3  ;;  %v4648_v35 = vsub.s32 %v513_v32, %v453_v3 }
   0xf   :  { %4061 = vmatpush3.bf16.msra.mxu0 %v4060_v14  ;;  %v63_v25 = vrot.slane %v62_v21, 2  ;;  %v70_v26 = vrot.slane %v69_v22, 2  ;;  %v4625_v14 = vsub.s32 0, %v453_v3 }
  0x10   :  { %4069 = vmatprep.subr.bf16.mxu0 %v4068_v45 }
  0x11   :  { %v64_v27 = vadd.f32 %v63_v25, %v62_v21  ;;  %v71_v28 = vadd.f32 %v70_v26, %v69_v22  ;;  %v4640_v25 = vld [vmem:[%s5338_s7] ss:$0 sm:$0xff] }
  0x13   :  { %v65_v29 = vrot.slane %v64_v27, 1  ;;  %v72_v30 = vrot.slane %v71_v28, 1 }
  0x15   :  { %v66_v33 = vadd.f32 %v65_v29, %v64_v27  ;;  %v73_v34 = vadd.f32 %v72_v30, %v71_v28 }
  0x17   :  { %v75_v37 = vmul.f32 0.125, %v66_v33  ;;  %v76_v38 = vmul.f32 0.125, %v73_v34 }
  0x19   :  { %v91_v41 = vsel %vm90_vm2, %v76_v38, %v75_v37 }
  0x1a   :  { %3856 = vmatmul.mubr.msk.f32.vlgmr.msra.gmra.mrb[0].mxu0 %vm59_vm0, %v91_v41  ;;  %3867 = vmatmul.mubr.msk.f32.vlgmr.msra.gmra.mrb[0].mxu1 %vm59_vm0, %v91_v41 }
  0x1b   :  { %4079 = vmatpush1.bf16.msra.mxu1 %v4561_v39  ;;  %427 = vmatprep.mubr.f32.mxu1 %v4399_v4 }
  0x1c   :  { %4081 = vmatprep.subr.bf16.mxu1 %v4563_v40  ;;  %3877 = vmatprep.mubr.msk.f32.mxu0 %vm59_vm0, %v4512_v7 }
  0x1d   :  { %4071 = vmatpush3.bf16.msra.mxu0 %v4068_v45  ;;  %v4656_v45 = vsub.s32 1, %v453_v3 }
  0x1e   :  { %4073 = vmatprep.subr.bf16.mxu0 %v4072_v50 }
  0x1f   :  { %4083 = vmatpush1.bf16.msra.mxu1 %v4585_v47 }
  0x20   :  { %4090 = vmatprep.subr.bf16.mxu1 %v4397_v0 }
  0x21   :  { %4075 = vmatpush3.bf16.msra.mxu0 %v4072_v50 }
  0x22   :  { %4084 = vmatprep.subr.bf16.mxu0 %v4397_v0 }
  0x24   :  { %3878 = vmatmul.mubr.msk.f32.vlgmr.msra.gmra.mrb[2].mxu0 %vm59_vm0, %v4517_v8 }
  0x25   :  { %3888 = vmatprep.mubr.msk.f32.mxu0 %vm4398_vm1, %v4399_v4 }
  0x8a   :  { %v4646_v33 = vpop.permute.xlu1 %505 }
  0xed   :  { %v160_v52 = vpop.f32.mrb[0].mxu0  ;;  %v4603_v53 = vpop.f32.mrb[0].mxu1 }
  0xee   :  { %v161_v54 = vadd.f32 %v3707_v51, %v160_v52  ;;  %v3857_v55 = vpop.f32.mrb[1].mxu0  ;;  %v3868_v56 = vpop.f32.mrb[1].mxu1 }
  0xf0   :  { %3714 = vmatmul.mubr.msk.f32.vlgmr.msra.gmra.mrb[2].mxu1 %vm59_vm0, %v161_v54 }
  0xf1   :  { %3899 = vmatprep.mubr.msk.f32.mxu1 %vm4398_vm1, %v4399_v4 }
  0xf7   :  { %v3879_v57 = vpop.f32.mrb[2].mxu0 }
  0xf8   :  { %v328_v58 = vpop.f32.mrb[3].mxu0  ;;  %v4633_v21 = vadd.f32 %v3879_v57, %v3711_v12 }
  0xf9   :  { %v4628_v17 = vadd.f32 %v3711_v12, %v328_v58  ;;  %v349_v12 = vld [vmem:[%s5339_s9] sm:$0xff] }
 0x1c3   :  { %v4616_v6 = vpop.f32.mrb[2].mxu1 }
 0x1c4   :  { %v431_v10 = vpop.f32.mrb[3].mxu1 }
 0x1c5   :  { %v447_v11 = vadd.f32 %v4614_v5, %v431_v10 }
 0x1c7   :  { %v455_v13 = vrot.slane %v447_v11, %v4618_v9 }
 0x1c9   :  { %v456_v15 = vcombine.high %v455_v13, %v455_v13  ;;  %v463_v16 = vrot.slane %v455_v13, %v4618_v9  ;;  %v350_v13 = vld [vmem:[%s5339_s9 + $0x8] sm:$0xff] }
 0x1cb   :  { %v470_v18 = vrot.slane %v456_v15, %v4618_v9  ;;  %v474_v19 = vrot.slane %v463_v16, %v4625_v14  ;;  %v4672_v15 = vpack.c.bf16 %v350_v13, %v349_v12  ;;  %v351_v16 = vld [vmem:[%s5339_s9 + $0x10] sm:$0xff] }
 0x1cc   :  { %v355_v12 = vld [vmem:[%s5343_s10 + $0x10] sm:$0xff] }
 0x1cd   :  { %v478_v20 = vrot.slane %v470_v18, %v4625_v14  ;;  %v481_v22 = vadd.f32 %v474_v19, %v4628_v17  ;;  %4086 = vmatpush3.bf16.msra.mxu0 %v4672_v15  ;;  %v352_v18 = vld [vmem:[%s5339_s9 + $0x18] sm:$0xff] }
 0x1ce   :  { %4087 = vmatprep.subr.bf16.mxu0 %v4397_v0  ;;  %v4682_v19 = vpack.c.bf16 %v352_v18, %v351_v16  ;;  %v356_v16 = vld [vmem:[%s5343_s10 + $0x18] sm:$0xff] }
 0x1cf   :  { %4245 = vtanh.f32 %v481_v22  ;;  %v482_v23 = vadd.f32 %v478_v20, %v4633_v21  ;;  %v4741_v18 = vpack.c.bf16 %v356_v16, %v355_v12 }
 0x1d1   :  { %4247 = vtanh.f32 %v482_v23  ;;  %4089 = vmatpush3.bf16.msra.mxu0 %v4682_v19 }
 0x1d2   :  { %4097 = vmatprep.subr.bf16.mxu0 %v4546_v24 }
 0x1d9   :  { %v4246_v26 = vpop.eup %4245 }
 0x1da   :  { %v491_v27 = vmul.f32 %v4246_v26, %v4640_v25 }
 0x1db   :  { %v4248_v28 = vpop.eup %4247 }
 0x1dc   :  { %v493_v29 = vsel %vm59_vm0, %v491_v27, 0.0  ;;  %v492_v30 = vmul.f32 %v4248_v28, %v4640_v25 }
 0x1dd   :  { %494 = vadd.xlane.f32.xlu0 %v493_v29 }
 0x1de   :  { %v496_v31 = vsel %vm59_vm0, %v492_v30, 0.0 }
 0x1e1   :  { %497 = vadd.xlane.f32.xlu0 %v496_v31 }
 0x26a   :  { %v495_v34 = vpop.xlane.xlu0 %494 }
 0x26b   :  { %v508_v36 = vadd.f32 %v4646_v33, %v495_v34 }
 0x26d   :  { %v517_v41 = vrot.slane %v508_v36, %v4648_v35 }
 0x26e   :  { %v498_v37 = vpop.xlane.xlu0 %497 }
 0x26f   :  { %v509_v38 = vadd.f32 %v4646_v33, %v498_v37 }
 0x271   :  { %v521_v42 = vrot.slane %v509_v38, %v4648_v35 }
 0x273   :  { %v522_v43 = vsel %vm90_vm2, %v521_v42, %v517_v41 }
 0x274   :  { %v525_v44 = vsel %vm524_vm3, %v522_v43, -inf }
 0x275   :  { %526 = vmax.xlane.f32.xlu1 %v525_v44 }
 0x302   :  { %v527_v46 = vpop.xlane.xlu1 %526 }
 0x303   :  { %v532_v48 = vrot.slane %v527_v46, %v4625_v14  ;;  %v536_v49 = vrot.slane %v527_v46, %v4656_v45 }
 0x305   :  { %v539_v50 = vsub.f32 %v508_v36, %v532_v48  ;;  %v540_v51 = vsub.f32 %v509_v38, %v536_v49  ;;  %v4706_v48 = vld [vmem:[%s5340_s6] ss:$0 sm:$0xff] }
 0x306   :  { %v4711_v49 = vld [vmem:[%s5341_s1] sm:$0xff] }
 0x307   :  { %v541_v52 = vmul.f32 1.442695, %v539_v50  ;;  %v543_v54 = vmul.f32 1.442695, %v540_v51  ;;  %v440_v51 = vadd.f32 %v4706_v48, %v4616_v6 }
 0x309   :  { %4249 = vpow2.f32 %v541_v52 }
 0x30a   :  { %4251 = vpow2.f32 %v543_v54 }
 0x313   :  { %v4250_v55 = vpop.eup %4249 }
 0x314   :  { %v4252_v56 = vpop.eup %4251  ;;  %548 = vperm.xlu0 %4244, %v4250_v55  }
 0x315   :  { %551 = vperm.xlu1 %4243, %v4252_v56  }
 0x393   :  { %v549_v57 = vpop.permute.xlu0 %548 }
 0x394   :  { %v552_v58 = vpop.permute.xlu1 %551  ;;  %v556_v59 = vrot.slane %v549_v57, %v4648_v35  ;;  %v3709_v57 = vld [vmem:[%s5342_s15] ss:$0 sm:$0xff] }
 0x395   :  { %v560_v60 = vrot.slane %v552_v58, %v4648_v35  ;;  %v242_v58 = vadd.f32 %v3709_v57, %v4603_v53  ;;  %v353_v53 = vld [vmem:[%s5343_s10] sm:$0xff] }
 0x397   :  { %v561_v61 = vsel %vm90_vm2, %v560_v60, %v556_v59 }
 0x398   :  { %v563_v62 = vsel %vm524_vm3, %v561_v61, 0.0 }
 0x399   :  { %564 = vadd.xlane.f32.xlu0 %v563_v62 }
 0x426   :  { %v565_v63 = vpop.xlane.xlu0 %564 }
 0x427   :  { %4253 = vrcp.f32 %v565_v63 }
 0x431   :  { %v4254_v1 = vpop.eup %4253 }
 0x432   :  { %v571_v2 = vrot.slane %v4254_v1, %v4625_v14  ;;  %v575_v10 = vrot.slane %v4254_v1, %v4656_v45 }
 0x434   :  { %v578_v3 = vmul.f32 %v4250_v55, %v571_v2  ;;  %v579_v11 = vmul.f32 %v4252_v56, %v575_v10 }
 0x436   :  { %582 = vperm.xlu1 %4243, %v578_v3  }
 0x43a   :  { %587 = vperm.xlu1 %4243, %v579_v11   ;;  %v354_v11 = vld [vmem:[%s5343_s10 + $0x8] sm:$0xff] }
 0x43b   :  { %v4735_v13 = vpack.c.bf16 %v354_v11, %v353_v53 }
 0x43d   :  { %4092 = vmatpush3.bf16.msra.mxu1 %v4735_v13 }
 0x43e   :  { %4093 = vmatprep.subr.bf16.mxu1 %v4397_v0 }
 0x441   :  { %4095 = vmatpush3.bf16.msra.mxu1 %v4741_v18 }
 0x442   :  { %4104 = vmatprep.subr.bf16.mxu1 %v4397_v0 }
 0x4b5   :  { %v4686_v20 = vpop.permute.xlu1 %582 }
 0x4b6   :  { %v590_v22 = vmul.f32 %v4686_v20, %v4512_v7 }
 0x4b8   :  { %v592_v23 = vsel %vm59_vm0, %v590_v22, 0.0 }
 0x4b9   :  { %v593_v26 = vrot.slane %v592_v23, 4  ;;  %v4691_v27 = vpop.permute.xlu1 %587 }
 0x4ba   :  { %v591_v28 = vmul.f32 %v4691_v27, %v4517_v8 }
 0x4bb   :  { %v594_v29 = vadd.f32 %v593_v26, %v592_v23 }
 0x4bc   :  { %v599_v30 = vsel %vm59_vm0, %v591_v28, 0.0 }
 0x4bd   :  { %v595_v31 = vrot.slane %v594_v29, 2  ;;  %v600_v32 = vrot.slane %v599_v30, 4 }
 0x4bf   :  { %v596_v34 = vadd.f32 %v595_v31, %v594_v29  ;;  %v601_v36 = vadd.f32 %v600_v32, %v599_v30 }
 0x4c1   :  { %v602_v37 = vrot.slane %v601_v36, 2  ;;  %v597_v38 = vrot.slane %v596_v34, 1 }
 0x4c3   :  { %v603_v41 = vadd.f32 %v602_v37, %v601_v36  ;;  %v598_v43 = vadd.f32 %v597_v38, %v596_v34 }
 0x4c5   :  { %v604_v42 = vrot.slane %v603_v41, 1 }
 0x4c7   :  { %v605_v44 = vadd.f32 %v604_v42, %v603_v41 }
 0x4c9   :  { %v608_v46 = vsel %vm90_vm2, %v605_v44, %v598_v43 }
 0x4ca   :  { %3889 = vmatmul.mubr.msk.f32.vlgmr.msra.gmra.mrb[4].mxu0 %vm59_vm0, %v608_v46 }
 0x4cb   :  { %4099 = vmatpush1.bf16.msra.mxu0 %v4561_v39  ;;  %856 = vmatprep.mubr.f32.mxu0 %v4399_v4 }
 0x4cc   :  { %4101 = vmatprep.subr.bf16.mxu0 %v4563_v40 }
 0x4cf   :  { %4103 = vmatpush1.bf16.msra.mxu0 %v4585_v47 }
 0x4d0   :  { %4110 = vmatprep.subr.bf16.mxu0 %v4397_v0 }
 0x59d   :  { %v677_v50 = vpop.f32.mrb[4].mxu0 }
 0x59e   :  { %v681_v52 = vadd.f32 %v677_v50, %v4711_v49  ;;  %v3890_v54 = vpop.f32.mrb[5].mxu0 }
 0x5a0   :  { %v682_v55 = vadd.f32 %v681_v52, %v440_v51 }
 0x5a2   :  { %4255 = vtanh.f32 %v682_v55  ;;  %v3720_v59 = vmul.f32 -1.442695, %v682_v55 }
 0x5a4   :  { %4257 = vpow2.f32 %v3720_v59 }
 0x5ac   :  { %v4256_v56 = vpop.eup %4255 }
 0x5ad   :  { %696 = vrot.lane.b32.xlu1 %v4256_v56, %s4402_s26 }
 0x5ae   :  { %v4258_v6 = vpop.eup %4257 }
 0x5af   :  { %v686_v60 = vadd.f32 1.0, %v4258_v6 }
 0x5b1   :  { %691 = vrot.lane.b32.xlu1 %v242_v58, %s4403_s13  ;;  %4259 = vrcp.f32 %v686_v60 }
 0x5bb   :  { %v4260_v61 = vpop.eup %4259 }
 0x61f   :  { %v697_v62 = vpop.permute.xlu1 %696 }
 0x620   :  { %v699_v63 = vmul.f32 %v4260_v61, %v697_v62 }
 0x622   :  { %701 = vrot.lane.b32.xlu1 %v699_v63, %s4403_s13 }
 0x623   :  { %v692_v1 = vpop.permute.xlu1 %691 }
 0x624   :  { %v694_v2 = vmul.f32 %v4260_v61, %v692_v1 }
 0x694   :  { %v702_v3 = vpop.permute.xlu1 %701 }
 0x695   :  { %v4723_v10 = vadd.f32 %v702_v3, %v694_v2 }
 0x697   :  { %4261 = vtanh.f32 %v4723_v10 }
 0x6a1   :  { %v4262_v22 = vpop.eup %4261 }
 0x6a2   :  { %707 = vrot.lane.b32.xlu1 %v4262_v22, %s4402_s26 }
 0x714   :  { %v708_v23 = vpop.permute.xlu1 %707 }
 0x715   :  { %v710_v26 = vmul.f32 %v4260_v61, %v708_v23 }
 0x717   :  { %718 = vrot.lane.b32.xlu1 %v710_v26, %s4403_s13 }
 0x789   :  { %v719_v28 = vpop.permute.xlu1 %718 }
 0x78a   :  { %3900 = vmatmul.mubr.msk.f32.vlgmr.msra.gmra.mrb[4].mxu1 %vm59_vm0, %v719_v28  ;;  %3723 = vmatmul.mubr.msk.f32.vlgmr.msra.gmra.mrb[6].mxu0 %vm59_vm0, %v719_v28 }
 0x78b   :  { %4106 = vmatpush3.bf16.msra.mxu1 %v4672_v15  ;;  %3910 = vmatprep.mubr.msk.f32.mxu1 %vm4398_vm1, %v4399_v4 }
 0x78c   :  { %4107 = vmatprep.subr.bf16.mxu1 %v4397_v0  ;;  %4112 = vmatpush3.bf16.msra.mxu0 %v4735_v13 }
 0x78d   :  { %4113 = vmatprep.subr.bf16.mxu0 %v4397_v0  ;;  %3921 = vmatprep.mubr.msk.f32.mxu0 %vm4398_vm1, %v4399_v4 }
 0x78f   :  { %4109 = vmatpush3.bf16.msra.mxu1 %v4682_v19 }
 0x790   :  { %4117 = vmatprep.subr.bf16.mxu1 %v4546_v24  ;;  %4115 = vmatpush3.bf16.msra.mxu0 %v4741_v18 }
 0x791   :  { %4124 = vmatprep.subr.bf16.mxu0 %v4397_v0 }
 0x85d   :  { %v4762_v29 = vpop.f32.mrb[4].mxu1  ;;  %v4764_v30 = vpop.f32.mrb[6].mxu0 }
 0x85e   :  { %v3901_v31 = vpop.f32.mrb[5].mxu1  ;;  %v860_v32 = vpop.f32.mrb[7].mxu0 }
 0x85f   :  { %v864_v34 = vadd.f32 %v4614_v5, %v860_v32 }
 0x861   :  { %v872_v36 = vrot.slane %v864_v34, %v4618_v9 }
 0x863   :  { %v873_v37 = vcombine.high %v872_v36, %v872_v36  ;;  %v880_v38 = vrot.slane %v872_v36, %v4618_v9 }
 0x865   :  { %v887_v41 = vrot.slane %v873_v37, %v4618_v9  ;;  %v891_v42 = vrot.slane %v880_v38, %v4625_v14 }
 0x867   :  { %v895_v43 = vrot.slane %v887_v41, %v4625_v14  ;;  %v898_v44 = vadd.f32 %v891_v42, %v4628_v17 }
 0x869   :  { %v899_v46 = vadd.f32 %v895_v43, %v4633_v21  ;;  %4263 = vtanh.f32 %v898_v44 }
 0x86b   :  { %4265 = vtanh.f32 %v899_v46 }
 0x873   :  { %v4264_v50 = vpop.eup %4263 }
 0x874   :  { %v902_v51 = vmul.f32 %v4264_v50, %v4640_v25 }
 0x875   :  { %v4266_v52 = vpop.eup %4265 }
 0x876   :  { %v904_v54 = vsel %vm59_vm0, %v902_v51, 0.0  ;;  %v903_v55 = vmul.f32 %v4266_v52, %v4640_v25  ;;  %v3614_v51 = vrot.slane %v4691_v27, %v4648_v35 }
 0x877   :  { %905 = vadd.xlane.f32.xlu0 %v904_v54  ;;  %v3610_v54 = vrot.slane %v4686_v20, %v4648_v35 }
 0x878   :  { %v907_v56 = vsel %vm59_vm0, %v903_v55, 0.0 }
 0x879   :  { %908 = vadd.xlane.f32.xlu1 %v907_v56 }
 0x904   :  { %v906_v57 = vpop.xlane.xlu0 %905 }
 0x905   :  { %v910_v58 = vadd.f32 %v906_v57, %v4646_v33 }
 0x906   :  { %v909_v59 = vpop.xlane.xlu1 %908 }
 0x907   :  { %v911_v6 = vadd.f32 %v909_v59, %v4646_v33  ;;  %v917_v60 = vrot.slane %v910_v58, %v4648_v35 }
 0x909   :  { %v921_v61 = vrot.slane %v911_v6, %v4648_v35 }
 0x90b   :  { %v922_v62 = vsel %vm90_vm2, %v921_v61, %v917_v60  ;;  %v3615_v60 = vsel %vm90_vm2, %v3614_v51, %v3610_v54 }
 0x90c   :  { %v924_v63 = vsel %vm524_vm3, %v922_v62, -inf }
 0x90d   :  { %925 = vmax.xlane.f32.xlu0 %v924_v63 }
 0x99a   :  { %v926_v1 = vpop.xlane.xlu0 %925 }
 0x99b   :  { %v931_v2 = vrot.slane %v926_v1, %v4625_v14  ;;  %v935_v3 = vrot.slane %v926_v1, %v4656_v45 }
 0x99d   :  { %v938_v53 = vsub.f32 %v910_v58, %v931_v2  ;;  %v939_v11 = vsub.f32 %v911_v6, %v935_v3 }
 0x99f   :  { %v940_v12 = vmul.f32 1.442695, %v938_v53  ;;  %v942_v16 = vmul.f32 1.442695, %v939_v11 }
 0x9a1   :  { %4267 = vpow2.f32 %v940_v12 }
 0x9a2   :  { %4269 = vpow2.f32 %v942_v16 }
 0x9ab   :  { %v4268_v22 = vpop.eup %4267 }
 0x9ac   :  { %947 = vperm.xlu0 %4244, %v4268_v22   ;;  %v4270_v23 = vpop.eup %4269 }
 0x9b0   :  { %950 = vperm.xlu0 %4244, %v4270_v23  }
 0xa2b   :  { %v948_v26 = vpop.permute.xlu0 %947 }
 0xa2c   :  { %v955_v31 = vrot.slane %v948_v26, %v4648_v35  ;;  %v863_v26 = vadd.f32 %v4706_v48, %v4764_v30  ;;  %v1096_v30 = vrot.slane %v4723_v10, 6  ;;  %v4842_v10 = vld [vmem:[%s5344_s11] ss:$0 sm:$0xff] }
 0xa2f   :  { %v951_v28 = vpop.permute.xlu0 %950 }
 0xa30   :  { %v959_v32 = vrot.slane %v951_v28, %v4648_v35 }
 0xa32   :  { %v960_v34 = vsel %vm90_vm2, %v959_v32, %v955_v31 }
 0xa33   :  { %v962_v36 = vsel %vm524_vm3, %v960_v34, 0.0  ;;  %v1085_v34 = vrot.slane %v863_v26, 6 }
 0xa34   :  { %963 = vadd.xlane.f32.xlu0 %v962_v36 }
 0xac1   :  { %v964_v37 = vpop.xlane.xlu0 %963 }
 0xac2   :  { %4271 = vrcp.f32 %v964_v37 }
 0xacc   :  { %v4272_v38 = vpop.eup %4271 }
 0xacd   :  { %v970_v41 = vrot.slane %v4272_v38, %v4625_v14  ;;  %v974_v43 = vrot.slane %v4272_v38, %v4656_v45 }
 0xacf   :  { %v977_v42 = vmul.f32 %v4268_v22, %v970_v41  ;;  %v978_v44 = vmul.f32 %v4270_v23, %v974_v43 }
 0xad1   :  { %981 = vperm.xlu1 %4243, %v977_v42  }
 0xad5   :  { %986 = vperm.xlu1 %4243, %v978_v44  }
 0xb50   :  { %v982_v46 = vpop.permute.xlu1 %981 }
 0xb51   :  { %v989_v50 = vmul.f32 %v982_v46, %v4512_v7  ;;  %v3620_v57 = vrot.slane %v982_v46, %v4648_v35 }
 0xb53   :  { %v991_v52 = vsel %vm59_vm0, %v989_v50, 0.0 }
 0xb54   :  { %v992_v55 = vrot.slane %v991_v52, 4  ;;  %v987_v56 = vpop.permute.xlu1 %986 }
 0xb55   :  { %v990_v58 = vmul.f32 %v987_v56, %v4517_v8  ;;  %v3624_v59 = vrot.slane %v987_v56, %v4648_v35 }
 0xb56   :  { %v993_v6 = vadd.f32 %v992_v55, %v991_v52 }
 0xb57   :  { %v998_v27 = vsel %vm59_vm0, %v990_v58, 0.0  ;;  %v3626_v61 = vsel %vm3625_vm4, %v3624_v59, %v3620_v57 }
 0xb58   :  { %v994_v62 = vrot.slane %v993_v6, 2  ;;  %v999_v63 = vrot.slane %v998_v27, 4  ;;  %v4805_v20 = vsel %vm3596_vm5, %v3615_v60, %v3626_v61 }
 0xb5a   :  { %v995_v1 = vadd.f32 %v994_v62, %v993_v6  ;;  %v1000_v2 = vadd.f32 %v999_v63, %v998_v27 }
 0xb5c   :  { %v1001_v3 = vrot.slane %v1000_v2, 2  ;;  %v996_v53 = vrot.slane %v995_v1, 1 }
 0xb5e   :  { %v1002_v11 = vadd.f32 %v1001_v3, %v1000_v2  ;;  %v997_v16 = vadd.f32 %v996_v53, %v995_v1  ;;  %v789_v1 = vadd.f32 %v4842_v10, %v4762_v29 }
 0xb60   :  { %v1003_v12 = vrot.slane %v1002_v11, 1 }
 0xb62   :  { %v1004_v22 = vadd.f32 %v1003_v12, %v1002_v11 }
 0xb64   :  { %v1007_v23 = vsel %vm90_vm2, %v1004_v22, %v997_v16 }
 0xb65   :  { %3911 = vmatmul.mubr.msk.f32.vlgmr.msra.gmra.mrb[6].mxu1 %vm59_vm0, %v1007_v23 }
 0xb66   :  { %4119 = vmatpush1.bf16.msra.mxu1 %v4561_v39  ;;  %1255 = vmatprep.mubr.f32.mxu1 %v4399_v4 }
 0xb67   :  { %4121 = vmatprep.subr.bf16.mxu1 %v4563_v40 }
 0xb6a   :  { %4123 = vmatpush1.bf16.msra.mxu1 %v4585_v47 }
 0xb6b   :  { %4130 = vmatprep.subr.bf16.mxu1 %v4397_v0 }
 0xc38   :  { %v1076_v28 = vpop.f32.mrb[6].mxu1 }
 0xc39   :  { %v1081_v31 = vrot.slane %v1076_v28, 6  ;;  %v3912_v32 = vpop.f32.mrb[7].mxu1 }
 0xc3b   :  { %v1083_v36 = vadd.f32 %v1081_v31, %v4711_v49 }
 0xc3d   :  { %v1087_v37 = vadd.f32 %v1085_v34, %v1083_v36 }
 0xc3f   :  { %4273 = vtanh.f32 %v1087_v37  ;;  %v3725_v41 = vmul.f32 -1.442695, %v1087_v37 }
 0xc41   :  { %4275 = vpow2.f32 %v3725_v41 }
 0xc49   :  { %v4274_v38 = vpop.eup %4273 }
 0xc4a   :  { %1100 = vrot.lane.b32.xlu1 %v4274_v38, %s4402_s26 }
 0xc4b   :  { %v4276_v42 = vpop.eup %4275 }
 0xc4c   :  { %v1091_v43 = vadd.f32 1.0, %v4276_v42 }
 0xc4e   :  { %4277 = vrcp.f32 %v1091_v43 }
 0xc58   :  { %v4278_v44 = vpop.eup %4277 }
 0xc59   :  { %v1098_v51 = vmul.f32 %v4278_v44, %v1096_v30 }
 0xcbc   :  { %v1101_v46 = vpop.permute.xlu1 %1100 }
 0xcbd   :  { %v1103_v50 = vmul.f32 %v4278_v44, %v1101_v46 }
 0xcbf   :  { %1105 = vrot.lane.b32.xlu1 %v1103_v50, %s4403_s13 }
 0xd31   :  { %v1106_v52 = vpop.permute.xlu1 %1105 }
 0xd32   :  { %v4820_v54 = vadd.f32 %v1106_v52, %v1098_v51 }
 0xd34   :  { %4279 = vtanh.f32 %v4820_v54 }
 0xd3e   :  { %v4280_v55 = vpop.eup %4279 }
 0xd3f   :  { %1111 = vrot.lane.b32.xlu0 %v4280_v55, %s4402_s26 }
 0xdb1   :  { %v1112_v56 = vpop.permute.xlu0 %1111 }
 0xdb2   :  { %v1114_v57 = vmul.f32 %v4278_v44, %v1112_v56 }
 0xdb4   :  { %v1116_v58 = vrot.slane %v1114_v57, 2 }
 0xdb6   :  { %1117 = vrot.lane.b32.xlu1 %v1116_v58, %s4403_s13 }
 0xe28   :  { %v1118_v59 = vpop.permute.xlu1 %1117 }
 0xe29   :  { %3922 = vmatmul.mubr.msk.f32.vlgmr.msra.gmra.mrb[8].mxu0 %vm59_vm0, %v1118_v59  ;;  %3727 = vmatmul.mubr.msk.f32.vlgmr.msra.gmra.mrb[8].mxu1 %vm59_vm0, %v1118_v59 }
 0xe2a   :  { %4126 = vmatpush3.bf16.msra.mxu0 %v4672_v15  ;;  %3932 = vmatprep.mubr.msk.f32.mxu0 %vm4398_vm1, %v4399_v4 }
 0xe2b   :  { %4127 = vmatprep.subr.bf16.mxu0 %v4397_v0  ;;  %4132 = vmatpush3.bf16.msra.mxu1 %v4735_v13 }
 0xe2c   :  { %4133 = vmatprep.subr.bf16.mxu1 %v4397_v0  ;;  %3943 = vmatprep.mubr.msk.f32.mxu1 %vm4398_vm1, %v4399_v4 }
 0xe2e   :  { %4129 = vmatpush3.bf16.msra.mxu0 %v4682_v19 }
 0xe2f   :  { %4137 = vmatprep.subr.bf16.mxu0 %v4546_v24  ;;  %4135 = vmatpush3.bf16.msra.mxu1 %v4741_v18 }
 0xe30   :  { %4144 = vmatprep.subr.bf16.mxu1 %v4397_v0 }
 0xefc   :  { %v1187_v6 = vpop.f32.mrb[8].mxu0  ;;  %v4844_v60 = vpop.f32.mrb[8].mxu1 }
 0xefd   :  { %v1188_v27 = vadd.f32 %v4842_v10, %v1187_v6  ;;  %v3923_v61 = vpop.f32.mrb[9].mxu0  ;;  %v1259_v62 = vpop.f32.mrb[9].mxu1 }
 0xefe   :  { %v1263_v63 = vadd.f32 %v4614_v5, %v1259_v62 }
 0xeff   :  { %v3579_v2 = vrot.slane %v1188_v27, 6 }
 0xf00   :  { %v1271_v3 = vrot.slane %v1263_v63, %v4618_v9 }
 0xf01   :  { %v4852_v53 = vsel %vm3596_vm5, %v789_v1, %v3579_v2 }
 0xf02   :  { %v1272_v11 = vcombine.high %v1271_v3, %v1271_v3  ;;  %v1279_v12 = vrot.slane %v1271_v3, %v4618_v9 }
 0xf04   :  { %v1286_v16 = vrot.slane %v1272_v11, %v4618_v9  ;;  %v1290_v22 = vrot.slane %v1279_v12, %v4625_v14 }
 0xf06   :  { %v1294_v23 = vrot.slane %v1286_v16, %v4625_v14  ;;  %v1297_v26 = vadd.f32 %v1290_v22, %v4628_v17 }
 0xf08   :  { %v1298_v28 = vadd.f32 %v1294_v23, %v4633_v21  ;;  %4281 = vtanh.f32 %v1297_v26 }
 0xf0a   :  { %4283 = vtanh.f32 %v1298_v28 }
 0xf12   :  { %v4282_v29 = vpop.eup %4281 }
 0xf13   :  { %v1301_v31 = vmul.f32 %v4282_v29, %v4640_v25 }
 0xf14   :  { %v4284_v32 = vpop.eup %4283 }
 0xf15   :  { %v1303_v34 = vsel %vm59_vm0, %v1301_v31, 0.0  ;;  %v1302_v36 = vmul.f32 %v4284_v32, %v4640_v25 }
 0xf16   :  { %1304 = vadd.xlane.f32.xlu1 %v1303_v34 }
 0xf17   :  { %v1306_v37 = vsel %vm59_vm0, %v1302_v36, 0.0 }
 0xf18   :  { %1307 = vadd.xlane.f32.xlu0 %v1306_v37 }
 0xfa3   :  { %v1305_v38 = vpop.xlane.xlu1 %1304 }
 0xfa4   :  { %v1309_v41 = vadd.f32 %v1305_v38, %v4646_v33 }
 0xfa5   :  { %v1308_v42 = vpop.xlane.xlu0 %1307 }
 0xfa6   :  { %v1310_v43 = vadd.f32 %v1308_v42, %v4646_v33  ;;  %v1316_v44 = vrot.slane %v1309_v41, %v4648_v35 }
 0xfa8   :  { %v1320_v46 = vrot.slane %v1310_v43, %v4648_v35 }
 0xfaa   :  { %v1321_v50 = vsel %vm90_vm2, %v1320_v46, %v1316_v44 }
 0xfab   :  { %v1323_v30 = vsel %vm524_vm3, %v1321_v50, -inf }
 0xfac   :  { %1324 = vmax.xlane.f32.xlu1 %v1323_v30 }
0x1039   :  { %v1325_v51 = vpop.xlane.xlu1 %1324 }
0x103a   :  { %v1330_v52 = vrot.slane %v1325_v51, %v4625_v14  ;;  %v1334_v55 = vrot.slane %v1325_v51, %v4656_v45 }
0x103c   :  { %v1337_v56 = vsub.f32 %v1309_v41, %v1330_v52  ;;  %v1338_v57 = vsub.f32 %v1310_v43, %v1334_v55 }
0x103e   :  { %v1339_v58 = vmul.f32 1.442695, %v1337_v56  ;;  %v1341_v59 = vmul.f32 1.442695, %v1338_v57 }
0x1040   :  { %4285 = vpow2.f32 %v1339_v58 }
0x1041   :  { %4287 = vpow2.f32 %v1341_v59 }
0x104a   :  { %v4286_v6 = vpop.eup %4285 }
0x104b   :  { %v4288_v27 = vpop.eup %4287  ;;  %1346 = vperm.xlu1 %4243, %v4286_v6  }
0x104c   :  { %1349 = vperm.xlu0 %4244, %v4288_v27  }
0x10ca   :  { %v1347_v61 = vpop.permute.xlu1 %1346 }
0x10cb   :  { %v1350_v62 = vpop.permute.xlu0 %1349  ;;  %v1354_v63 = vrot.slane %v1347_v61, %v4648_v35 }
0x10cc   :  { %v1358_v1 = vrot.slane %v1350_v62, %v4648_v35 }
0x10ce   :  { %v1359_v2 = vsel %vm90_vm2, %v1358_v1, %v1354_v63 }
0x10cf   :  { %v1361_v3 = vsel %vm524_vm3, %v1359_v2, 0.0 }
0x10d0   :  { %1362 = vadd.xlane.f32.xlu1 %v1361_v3 }
0x115d   :  { %v1363_v11 = vpop.xlane.xlu1 %1362 }
0x115e   :  { %4289 = vrcp.f32 %v1363_v11 }
0x1168   :  { %v4290_v12 = vpop.eup %4289 }
0x1169   :  { %v1369_v16 = vrot.slane %v4290_v12, %v4625_v14  ;;  %v1373_v23 = vrot.slane %v4290_v12, %v4656_v45 }
0x116b   :  { %v1376_v22 = vmul.f32 %v4286_v6, %v1369_v16  ;;  %v1377_v26 = vmul.f32 %v4288_v27, %v1373_v23 }
0x116d   :  { %1380 = vperm.xlu0 %4244, %v1376_v22  }
0x1171   :  { %1385 = vperm.xlu0 %4244, %v1377_v26  }
0x11ec   :  { %v1381_v28 = vpop.permute.xlu0 %1380 }
0x11ed   :  { %v1388_v29 = vmul.f32 %v1381_v28, %v4512_v7  ;;  %v3631_v36 = vrot.slane %v1381_v28, %v4648_v35 }
0x11ef   :  { %v1390_v31 = vsel %vm59_vm0, %v1388_v29, 0.0 }
0x11f0   :  { %v1391_v32 = vrot.slane %v1390_v31, 4  ;;  %v1386_v34 = vpop.permute.xlu0 %1385 }
0x11f1   :  { %v1389_v37 = vmul.f32 %v1386_v34, %v4517_v8  ;;  %v3635_v38 = vrot.slane %v1386_v34, %v4648_v35 }
0x11f2   :  { %v1392_v41 = vadd.f32 %v1391_v32, %v1390_v31 }
0x11f3   :  { %v1397_v42 = vsel %vm59_vm0, %v1389_v37, 0.0  ;;  %v3637_v43 = vsel %vm3636_vm6, %v3635_v38, %v3631_v36 }
0x11f4   :  { %v1393_v44 = vrot.slane %v1392_v41, 2  ;;  %v1398_v46 = vrot.slane %v1397_v42, 4  ;;  %v4887_v7 = vsel %vm3598_vm7, %v4805_v20, %v3637_v43  ;;  %v1262_v20 = vadd.f32 %v4706_v48, %v4844_v60 }
0x11f5   :  { %v1495_v60 = vrot.slane %v4820_v54, 6 }
0x11f6   :  { %v1394_v50 = vadd.f32 %v1393_v44, %v1392_v41  ;;  %v1399_v30 = vadd.f32 %v1398_v46, %v1397_v42  ;;  %v1484_v61 = vrot.slane %v1262_v20, 4 }
0x11f8   :  { %v1400_v51 = vrot.slane %v1399_v30, 2  ;;  %v1395_v52 = vrot.slane %v1394_v50, 1 }
0x11fa   :  { %v1401_v55 = vadd.f32 %v1400_v51, %v1399_v30  ;;  %v1396_v8 = vadd.f32 %v1395_v52, %v1394_v50 }
0x11fc   :  { %v1402_v56 = vrot.slane %v1401_v55, 1 }
0x11fe   :  { %v1403_v57 = vadd.f32 %v1402_v56, %v1401_v55 }
0x1200   :  { %v1406_v58 = vsel %vm90_vm2, %v1403_v57, %v1396_v8 }
0x1201   :  { %3933 = vmatmul.mubr.msk.f32.vlgmr.msra.gmra.mrb[10].mxu0 %vm59_vm0, %v1406_v58 }
0x1202   :  { %4139 = vmatpush1.bf16.msra.mxu0 %v4561_v39  ;;  %1654 = vmatprep.mubr.f32.mxu0 %v4399_v4 }
0x1203   :  { %4141 = vmatprep.subr.bf16.mxu0 %v4563_v40 }
0x1206   :  { %4143 = vmatpush1.bf16.msra.mxu0 %v4585_v47 }
0x1207   :  { %4150 = vmatprep.subr.bf16.mxu0 %v4397_v0 }
0x12d4   :  { %v1475_v59 = vpop.f32.mrb[10].mxu0 }
0x12d5   :  { %v1480_v6 = vrot.slane %v1475_v59, 4  ;;  %v3934_v27 = vpop.f32.mrb[11].mxu0 }
0x12d7   :  { %v1482_v62 = vadd.f32 %v1480_v6, %v4711_v49 }
0x12d9   :  { %v1486_v63 = vadd.f32 %v1484_v61, %v1482_v62 }
0x12db   :  { %4291 = vtanh.f32 %v1486_v63  ;;  %v3729_v2 = vmul.f32 -1.442695, %v1486_v63 }
0x12dd   :  { %4293 = vpow2.f32 %v3729_v2 }
0x12e5   :  { %v4292_v1 = vpop.eup %4291 }
0x12e6   :  { %1499 = vrot.lane.b32.xlu0 %v4292_v1, %s4402_s26 }
0x12e7   :  { %v4294_v3 = vpop.eup %4293 }
0x12e8   :  { %v1490_v11 = vadd.f32 1.0, %v4294_v3 }
0x12ea   :  { %4295 = vrcp.f32 %v1490_v11 }
0x12f4   :  { %v4296_v12 = vpop.eup %4295 }
0x12f5   :  { %v1497_v23 = vmul.f32 %v4296_v12, %v1495_v60 }
0x1358   :  { %v1500_v16 = vpop.permute.xlu0 %1499 }
0x1359   :  { %v1502_v22 = vmul.f32 %v4296_v12, %v1500_v16 }
0x135b   :  { %1504 = vrot.lane.b32.xlu0 %v1502_v22, %s4403_s13 }
0x13cd   :  { %v1505_v26 = vpop.permute.xlu0 %1504 }
0x13ce   :  { %v4902_v28 = vadd.f32 %v1505_v26, %v1497_v23 }
0x13d0   :  { %4297 = vtanh.f32 %v4902_v28 }
0x13da   :  { %v4298_v29 = vpop.eup %4297 }
0x13db   :  { %1510 = vrot.lane.b32.xlu0 %v4298_v29, %s4402_s26 }
0x144d   :  { %v1511_v31 = vpop.permute.xlu0 %1510 }
0x144e   :  { %v1513_v32 = vmul.f32 %v4296_v12, %v1511_v31 }
0x1450   :  { %v1515_v34 = vrot.slane %v1513_v32, 4 }
0x1452   :  { %1516 = vrot.lane.b32.xlu0 %v1515_v34, %s4403_s13 }
0x14c4   :  { %v1517_v36 = vpop.permute.xlu0 %1516 }
0x14c5   :  { %3944 = vmatmul.mubr.msk.f32.vlgmr.msra.gmra.mrb[10].mxu1 %vm59_vm0, %v1517_v36  ;;  %3731 = vmatmul.mubr.msk.f32.vlgmr.msra.gmra.mrb[12].mxu0 %vm59_vm0, %v1517_v36 }
0x14c6   :  { %4146 = vmatpush3.bf16.msra.mxu1 %v4672_v15  ;;  %3954 = vmatprep.mubr.msk.f32.mxu1 %vm4398_vm1, %v4399_v4 }
0x14c7   :  { %4147 = vmatprep.subr.bf16.mxu1 %v4397_v0  ;;  %4152 = vmatpush3.bf16.msra.mxu0 %v4735_v13 }
0x14c8   :  { %4153 = vmatprep.subr.bf16.mxu0 %v4397_v0  ;;  %3965 = vmatprep.mubr.msk.f32.mxu0 %vm4398_vm1, %v4399_v4 }
0x14ca   :  { %4149 = vmatpush3.bf16.msra.mxu1 %v4682_v19 }
0x14cb   :  { %4157 = vmatprep.subr.bf16.mxu1 %v4546_v24  ;;  %4155 = vmatpush3.bf16.msra.mxu0 %v4741_v18 }
0x14cc   :  { %4164 = vmatprep.subr.bf16.mxu0 %v4397_v0 }
0x1598   :  { %v1586_v54 = vpop.f32.mrb[10].mxu1  ;;  %v4921_v37 = vpop.f32.mrb[12].mxu0 }
0x1599   :  { %v1587_v38 = vadd.f32 %v4842_v10, %v1586_v54  ;;  %v3945_v41 = vpop.f32.mrb[11].mxu1  ;;  %v1658_v42 = vpop.f32.mrb[13].mxu0 }
0x159a   :  { %v1662_v43 = vadd.f32 %v4614_v5, %v1658_v42 }
0x159b   :  { %v3582_v44 = vrot.slane %v1587_v38, 4 }
0x159c   :  { %v1670_v46 = vrot.slane %v1662_v43, %v4618_v9 }
0x159d   :  { %v4928_v50 = vsel %vm3598_vm7, %v4852_v53, %v3582_v44 }
0x159e   :  { %v1671_v30 = vcombine.high %v1670_v46, %v1670_v46  ;;  %v1678_v51 = vrot.slane %v1670_v46, %v4618_v9 }
0x15a0   :  { %v1685_v52 = vrot.slane %v1671_v30, %v4618_v9  ;;  %v1689_v55 = vrot.slane %v1678_v51, %v4625_v14 }
0x15a2   :  { %v1693_v56 = vrot.slane %v1685_v52, %v4625_v14  ;;  %v1696_v8 = vadd.f32 %v1689_v55, %v4628_v17  ;;  %v4957_v55 = vld [vmem:[%s5352_s20] sm:$0xff] }
0x15a4   :  { %v1697_v5 = vadd.f32 %v1693_v56, %v4633_v21  ;;  %4299 = vtanh.f32 %v1696_v8 }
0x15a6   :  { %4301 = vtanh.f32 %v1697_v5 }
0x15ae   :  { %v4300_v57 = vpop.eup %4299 }
0x15af   :  { %v1700_v58 = vmul.f32 %v4300_v57, %v4640_v25 }
0x15b0   :  { %v4302_v53 = vpop.eup %4301 }
0x15b1   :  { %v1702_v20 = vsel %vm59_vm0, %v1700_v58, 0.0  ;;  %v1701_v59 = vmul.f32 %v4302_v53, %v4640_v25  ;;  %v4965_v53 = vld [vmem:[%s5352_s20 + $0x8] sm:$0xff] }
0x15b2   :  { %1703 = vadd.xlane.f32.xlu0 %v1702_v20 }
0x15b3   :  { %v1705_v6 = vsel %vm59_vm0, %v1701_v59, 0.0 }
0x15b4   :  { %1706 = vadd.xlane.f32.xlu1 %v1705_v6 }
0x163f   :  { %v1704_v27 = vpop.xlane.xlu0 %1703 }
0x1640   :  { %v1708_v61 = vadd.f32 %v1704_v27, %v4646_v33 }
0x1641   :  { %v1707_v62 = vpop.xlane.xlu1 %1706 }
0x1642   :  { %v1709_v63 = vadd.f32 %v1707_v62, %v4646_v33  ;;  %v1715_v1 = vrot.slane %v1708_v61, %v4648_v35 }
0x1644   :  { %v1719_v2 = vrot.slane %v1709_v63, %v4648_v35 }
0x1646   :  { %v1720_v3 = vsel %vm90_vm2, %v1719_v2, %v1715_v1 }
0x1647   :  { %v1722_v11 = vsel %vm524_vm3, %v1720_v3, -inf }
0x1648   :  { %1723 = vmax.xlane.f32.xlu1 %v1722_v11 }
0x16d5   :  { %v1724_v25 = vpop.xlane.xlu1 %1723 }
0x16d6   :  { %v1729_v12 = vrot.slane %v1724_v25, %v4625_v14  ;;  %v1733_v16 = vrot.slane %v1724_v25, %v4656_v45 }
0x16d8   :  { %v1736_v22 = vsub.f32 %v1708_v61, %v1729_v12  ;;  %v1737_v60 = vsub.f32 %v1709_v63, %v1733_v16 }
0x16da   :  { %v1738_v23 = vmul.f32 1.442695, %v1736_v22  ;;  %v1740_v26 = vmul.f32 1.442695, %v1737_v60 }
0x16dc   :  { %4303 = vpow2.f32 %v1738_v23 }
0x16dd   :  { %4305 = vpow2.f32 %v1740_v26 }
0x16e6   :  { %v4304_v29 = vpop.eup %4303 }
0x16e7   :  { %1745 = vperm.xlu1 %4243, %v4304_v29   ;;  %v4306_v31 = vpop.eup %4305 }
0x16eb   :  { %1748 = vperm.xlu1 %4243, %v4306_v31  }
0x1766   :  { %v1746_v32 = vpop.permute.xlu1 %1745 }
0x1767   :  { %v1753_v36 = vrot.slane %v1746_v32, %v4648_v35 }
0x176a   :  { %v1749_v34 = vpop.permute.xlu1 %1748 }
0x176b   :  { %v1757_v54 = vrot.slane %v1749_v34, %v4648_v35 }
0x176d   :  { %v1758_v38 = vsel %vm90_vm2, %v1757_v54, %v1753_v36 }
0x176e   :  { %v1760_v41 = vsel %vm524_vm3, %v1758_v38, 0.0 }
0x176f   :  { %1761 = vadd.xlane.f32.xlu1 %v1760_v41 }
0x17fc   :  { %v1762_v42 = vpop.xlane.xlu1 %1761 }
0x17fd   :  { %4307 = vrcp.f32 %v1762_v42 }
0x1807   :  { %v4308_v43 = vpop.eup %4307 }
0x1808   :  { %v1768_v44 = vrot.slane %v4308_v43, %v4625_v14  ;;  %v1772_v30 = vrot.slane %v4308_v43, %v4656_v45 }
0x180a   :  { %v1775_v46 = vmul.f32 %v4304_v29, %v1768_v44  ;;  %v1776_v51 = vmul.f32 %v4306_v31, %v1772_v30 }
0x180c   :  { %1779 = vperm.xlu0 %4244, %v1775_v46  }
0x1810   :  { %1784 = vperm.xlu0 %4244, %v1776_v51  }
0x188b   :  { %v1780_v52 = vpop.permute.xlu0 %1779 }
0x188c   :  { %v1787_v56 = vmul.f32 %v4957_v55, %v1780_v52  ;;  %v3642_v58 = vrot.slane %v1780_v52, %v4648_v35 }
0x188e   :  { %v1789_v8 = vsel %vm59_vm0, %v1787_v56, 0.0 }
0x188f   :  { %v1790_v5 = vrot.slane %v1789_v8, 4  ;;  %v1785_v57 = vpop.permute.xlu0 %1784 }
0x1890   :  { %v1788_v20 = vmul.f32 %v4965_v53, %v1785_v57  ;;  %v3646_v59 = vrot.slane %v1785_v57, %v4648_v35 }
0x1891   :  { %v1791_v6 = vadd.f32 %v1790_v5, %v1789_v8 }
0x1892   :  { %v1796_v27 = vsel %vm59_vm0, %v1788_v20, 0.0  ;;  %v3648_v61 = vsel %vm3647_vm8, %v3646_v59, %v3642_v58 }
0x1893   :  { %v1792_v62 = vrot.slane %v1791_v6, 2  ;;  %v1797_v63 = vrot.slane %v1796_v27, 4  ;;  %v3692_v1 = vsel %vm3600_vm9, %v4887_v7, %v3648_v61  ;;  %v1661_v7 = vadd.f32 %v4706_v48, %v4921_v37 }
0x1894   :  { %3697 = vst.msk [vmem:[%s5345_s17] sm:$0xff] %vm3696_vm10, %v3692_v1  ;;  %v1894_v48 = vrot.slane %v4902_v28, 6 }
0x1895   :  { %v1793_v2 = vadd.f32 %v1792_v62, %v1791_v6  ;;  %v1798_v3 = vadd.f32 %v1797_v63, %v1796_v27  ;;  %v1883_v32 = vrot.slane %v1661_v7, 2  ;;  %v5015_v6 = vld [vmem:[%s5336_s5] ss:$0 sm:$0xff] }
0x1897   :  { %v1799_v11 = vrot.slane %v1798_v3, 2  ;;  %v1794_v25 = vrot.slane %v1793_v2, 1 }
0x1899   :  { %v1800_v12 = vadd.f32 %v1799_v11, %v1798_v3  ;;  %v1795_v22 = vadd.f32 %v1794_v25, %v1793_v2 }
0x189b   :  { %v1801_v16 = vrot.slane %v1800_v12, 1 }
0x189d   :  { %v1802_v60 = vadd.f32 %v1801_v16, %v1800_v12  ;;  %v5033_v16 = vld [vmem:[%s5338_s7] ss:$0 sm:$0xff] }
0x189f   :  { %v1805_v23 = vsel %vm90_vm2, %v1802_v60, %v1795_v22 }
0x18a0   :  { %3955 = vmatmul.mubr.msk.f32.vlgmr.msra.gmra.mrb[12].mxu1 %vm59_vm0, %v1805_v23 }
0x18a1   :  { %4159 = vmatpush1.bf16.msra.mxu1 %v4561_v39  ;;  %2053 = vmatprep.mubr.f32.mxu1 %v4399_v4 }
0x18a2   :  { %4161 = vmatprep.subr.bf16.mxu1 %v4563_v40 }
0x18a5   :  { %4163 = vmatpush1.bf16.msra.mxu1 %v4585_v47 }
0x18a6   :  { %4170 = vmatprep.subr.bf16.mxu1 %v4397_v0 }
0x1973   :  { %v1874_v26 = vpop.f32.mrb[12].mxu1 }
0x1974   :  { %v1879_v29 = vrot.slane %v1874_v26, 2  ;;  %v3956_v31 = vpop.f32.mrb[13].mxu1 }
0x1976   :  { %v1881_v34 = vadd.f32 %v1879_v29, %v4711_v49 }
0x1978   :  { %v1885_v36 = vadd.f32 %v1883_v32, %v1881_v34 }
0x197a   :  { %4309 = vtanh.f32 %v1885_v36  ;;  %v3733_v38 = vmul.f32 -1.442695, %v1885_v36 }
0x197c   :  { %4311 = vpow2.f32 %v3733_v38 }
0x1984   :  { %v4310_v54 = vpop.eup %4309 }
0x1985   :  { %1898 = vrot.lane.b32.xlu0 %v4310_v54, %s4402_s26 }
0x1986   :  { %v4312_v41 = vpop.eup %4311 }
0x1987   :  { %v1889_v42 = vadd.f32 1.0, %v4312_v41 }
0x1989   :  { %4313 = vrcp.f32 %v1889_v42 }
0x1993   :  { %v4314_v43 = vpop.eup %4313 }
0x1994   :  { %v1896_v37 = vmul.f32 %v4314_v43, %v1894_v48 }
0x19f7   :  { %v1899_v44 = vpop.permute.xlu0 %1898 }
0x19f8   :  { %v1901_v46 = vmul.f32 %v4314_v43, %v1899_v44 }
0x19fa   :  { %1903 = vrot.lane.b32.xlu0 %v1901_v46, %s4403_s13 }
0x1a6c   :  { %v1904_v30 = vpop.permute.xlu0 %1903 }
0x1a6d   :  { %v4990_v49 = vadd.f32 %v1904_v30, %v1896_v37 }
0x1a6f   :  { %4315 = vtanh.f32 %v4990_v49 }
0x1a79   :  { %v4316_v51 = vpop.eup %4315 }
0x1a7a   :  { %1909 = vrot.lane.b32.xlu0 %v4316_v51, %s4402_s26 }
0x1aec   :  { %v1910_v52 = vpop.permute.xlu0 %1909 }
0x1aed   :  { %v1912_v56 = vmul.f32 %v4314_v43, %v1910_v52 }
0x1aef   :  { %v1914_v8 = vrot.slane %v1912_v56, 6 }
0x1af1   :  { %1915 = vrot.lane.b32.xlu1 %v1914_v8, %s4403_s13 }
0x1b63   :  { %v1916_v5 = vpop.permute.xlu1 %1915 }
0x1b64   :  { %3966 = vmatmul.mubr.msk.f32.vlgmr.msra.gmra.mrb[14].mxu0 %vm59_vm0, %v1916_v5  ;;  %3735 = vmatmul.mubr.msk.f32.vlgmr.msra.gmra.mrb[14].mxu1 %vm59_vm0, %v1916_v5 }
0x1b65   :  { %4166 = vmatpush3.bf16.msra.mxu0 %v4672_v15  ;;  %3976 = vmatprep.mubr.msk.f32.mxu0 %vm4398_vm1, %v4399_v4 }
0x1b66   :  { %4167 = vmatprep.subr.bf16.mxu0 %v4397_v0  ;;  %4172 = vmatpush3.bf16.msra.mxu1 %v4735_v13 }
0x1b67   :  { %4173 = vmatprep.subr.bf16.mxu1 %v4397_v0  ;;  %3987 = vmatprep.mubr.msk.f32.mxu1 %vm4398_vm1, %v4399_v4 }
0x1b69   :  { %4169 = vmatpush3.bf16.msra.mxu0 %v4682_v19 }
0x1b6a   :  { %4177 = vmatprep.subr.bf16.mxu0 %v4546_v24  ;;  %4175 = vmatpush3.bf16.msra.mxu1 %v4741_v18 }
0x1b6b   :  { %4184 = vmatprep.subr.bf16.mxu1 %v4397_v0 }
0x1c37   :  { %v1985_v28 = vpop.f32.mrb[14].mxu0  ;;  %v5009_v57 = vpop.f32.mrb[14].mxu1 }
0x1c38   :  { %v1986_v58 = vadd.f32 %v4842_v10, %v1985_v28  ;;  %v3967_v20 = vpop.f32.mrb[15].mxu0  ;;  %v2057_v59 = vpop.f32.mrb[15].mxu1 }
0x1c39   :  { %v2061_v27 = vadd.f32 %v5015_v6, %v2057_v59 }
0x1c3a   :  { %v3585_v61 = vrot.slane %v1986_v58, 2 }
0x1c3b   :  { %v2069_v62 = vrot.slane %v2061_v27, %v4618_v9 }
0x1c3c   :  { %v3601_v63 = vsel %vm3600_vm9, %v4928_v50, %v3585_v61 }
0x1c3d   :  { %3605 = vst [vmem:[%s5346_s16] sm:$0xff] %v3601_v63  ;;  %v2070_v10 = vcombine.high %v2069_v62, %v2069_v62  ;;  %v2077_v1 = vrot.slane %v2069_v62, %v4618_v9 }
0x1c3f   :  { %v2084_v2 = vrot.slane %v2070_v10, %v4618_v9  ;;  %v2088_v3 = vrot.slane %v2077_v1, %v4625_v14 }
0x1c41   :  { %v2092_v11 = vrot.slane %v2084_v2, %v4625_v14  ;;  %v2095_v25 = vadd.f32 %v2088_v3, %v4628_v17 }
0x1c43   :  { %v2096_v12 = vadd.f32 %v2092_v11, %v4633_v21  ;;  %4317 = vtanh.f32 %v2095_v25 }
0x1c45   :  { %4319 = vtanh.f32 %v2096_v12 }
0x1c4d   :  { %v4318_v50 = vpop.eup %4317 }
0x1c4e   :  { %v2099_v22 = vmul.f32 %v5033_v16, %v4318_v50 }
0x1c4f   :  { %v4320_v60 = vpop.eup %4319 }
0x1c50   :  { %v2101_v23 = vsel %vm59_vm0, %v2099_v22, 0.0  ;;  %v2100_v7 = vmul.f32 %v5033_v16, %v4320_v60 }
0x1c51   :  { %2102 = vadd.xlane.f32.xlu0 %v2101_v23 }
0x1c52   :  { %v2104_v26 = vsel %vm59_vm0, %v2100_v7, 0.0 }
0x1c53   :  { %2105 = vadd.xlane.f32.xlu1 %v2104_v26 }
0x1cde   :  { %v2103_v29 = vpop.xlane.xlu0 %2102 }
0x1cdf   :  { %v2107_v31 = vadd.f32 %v2103_v29, %v4646_v33 }
0x1ce0   :  { %v2106_v32 = vpop.xlane.xlu1 %2105 }
0x1ce1   :  { %v2108_v34 = vadd.f32 %v2106_v32, %v4646_v33  ;;  %v2114_v36 = vrot.slane %v2107_v31, %v4648_v35 }
0x1ce3   :  { %v2118_v54 = vrot.slane %v2108_v34, %v4648_v35 }
0x1ce5   :  { %v2119_v38 = vsel %vm90_vm2, %v2118_v54, %v2114_v36 }
0x1ce6   :  { %v2121_v41 = vsel %vm524_vm3, %v2119_v38, -inf }
0x1ce7   :  { %2122 = vmax.xlane.f32.xlu0 %v2121_v41  ;;  %v5073_v41 = vld [vmem:[%s5341_s1 + $0x8] sm:$0xff] }
0x1d74   :  { %v2123_v42 = vpop.xlane.xlu0 %2122 }
0x1d75   :  { %v2128_v43 = vrot.slane %v2123_v42, %v4625_v14  ;;  %v2132_v44 = vrot.slane %v2123_v42, %v4656_v45 }
0x1d77   :  { %v2135_v46 = vsub.f32 %v2107_v31, %v2128_v43  ;;  %v2136_v48 = vsub.f32 %v2108_v34, %v2132_v44  ;;  %v5078_v43 = vld [vmem:[%s5340_s6] ss:$0 sm:$0xff] }
0x1d78   :  { %v2060_v44 = vadd.f32 %v5078_v43, %v5009_v57  ;;  %v2287_v57 = vrot.slane %v4990_v49, 6 }
0x1d79   :  { %v2137_v37 = vmul.f32 1.442695, %v2135_v46  ;;  %v2139_v30 = vmul.f32 1.442695, %v2136_v48 }
0x1d7b   :  { %4321 = vpow2.f32 %v2137_v37 }
0x1d7c   :  { %4323 = vpow2.f32 %v2139_v30 }
0x1d85   :  { %v4322_v51 = vpop.eup %4321 }
0x1d86   :  { %v4324_v52 = vpop.eup %4323  ;;  %2144 = vperm.xlu0 %4244, %v4322_v51  }
0x1d87   :  { %2147 = vperm.xlu1 %4243, %v4324_v52  }
0x1e05   :  { %v2145_v56 = vpop.permute.xlu0 %2144 }
0x1e06   :  { %v2148_v8 = vpop.permute.xlu1 %2147  ;;  %v2152_v5 = vrot.slane %v2145_v56, %v4648_v35 }
0x1e07   :  { %v2156_v28 = vrot.slane %v2148_v8, %v4648_v35 }
0x1e09   :  { %v2157_v58 = vsel %vm90_vm2, %v2156_v28, %v2152_v5 }
0x1e0a   :  { %v2159_v20 = vsel %vm524_vm3, %v2157_v58, 0.0 }
0x1e0b   :  { %2160 = vadd.xlane.f32.xlu0 %v2159_v20 }
0x1e98   :  { %v2161_v59 = vpop.xlane.xlu0 %2160 }
0x1e99   :  { %4325 = vrcp.f32 %v2161_v59 }
0x1ea3   :  { %v4326_v27 = vpop.eup %4325 }
0x1ea4   :  { %v2167_v61 = vrot.slane %v4326_v27, %v4625_v14  ;;  %v2171_v63 = vrot.slane %v4326_v27, %v4656_v45 }
0x1ea6   :  { %v2174_v62 = vmul.f32 %v4322_v51, %v2167_v61  ;;  %v2175_v10 = vmul.f32 %v4324_v52, %v2171_v63 }
0x1ea8   :  { %2178 = vperm.xlu1 %4243, %v2174_v62  }
0x1eac   :  { %2183 = vperm.xlu1 %4243, %v2175_v10  }
0x1f27   :  { %v5053_v1 = vpop.permute.xlu1 %2178 }
0x1f28   :  { %v2186_v2 = vmul.f32 %v4957_v55, %v5053_v1 }
0x1f2a   :  { %v2188_v3 = vsel %vm59_vm0, %v2186_v2, 0.0 }
0x1f2b   :  { %v2189_v11 = vrot.slane %v2188_v3, 4  ;;  %v5058_v25 = vpop.permute.xlu1 %2183 }
0x1f2c   :  { %v2187_v12 = vmul.f32 %v4965_v53, %v5058_v25 }
0x1f2d   :  { %v2190_v50 = vadd.f32 %v2189_v11, %v2188_v3 }
0x1f2e   :  { %v2195_v22 = vsel %vm59_vm0, %v2187_v12, 0.0 }
0x1f2f   :  { %v2191_v60 = vrot.slane %v2190_v50, 2  ;;  %v2196_v23 = vrot.slane %v2195_v22, 4 }
0x1f31   :  { %v2192_v7 = vadd.f32 %v2191_v60, %v2190_v50  ;;  %v2197_v26 = vadd.f32 %v2196_v23, %v2195_v22 }
0x1f33   :  { %v2198_v29 = vrot.slane %v2197_v26, 2  ;;  %v2193_v31 = vrot.slane %v2192_v7, 1 }
0x1f35   :  { %v2199_v32 = vadd.f32 %v2198_v29, %v2197_v26  ;;  %v2194_v36 = vadd.f32 %v2193_v31, %v2192_v7 }
0x1f37   :  { %v2200_v34 = vrot.slane %v2199_v32, 1 }
0x1f39   :  { %v2201_v54 = vadd.f32 %v2200_v34, %v2199_v32 }
0x1f3b   :  { %v2204_v38 = vsel %vm90_vm2, %v2201_v54, %v2194_v36 }
0x1f3c   :  { %3977 = vmatmul.mubr.msk.f32.vlgmr.msra.gmra.mrb[16].mxu0 %vm59_vm0, %v2204_v38 }
0x1f3d   :  { %4179 = vmatpush1.bf16.msra.mxu0 %v4561_v39  ;;  %2445 = vmatprep.mubr.f32.mxu0 %v4399_v4 }
0x1f3e   :  { %4181 = vmatprep.subr.bf16.mxu0 %v4563_v40 }
0x1f41   :  { %4183 = vmatpush1.bf16.msra.mxu0 %v4585_v47 }
0x1f42   :  { %4190 = vmatprep.subr.bf16.mxu0 %v4397_v0 }
0x200f   :  { %v2273_v42 = vpop.f32.mrb[16].mxu0 }
0x2010   :  { %v2277_v46 = vadd.f32 %v2273_v42, %v5073_v41  ;;  %v3978_v48 = vpop.f32.mrb[17].mxu0 }
0x2012   :  { %v2278_v37 = vadd.f32 %v2277_v46, %v2060_v44 }
0x2014   :  { %4327 = vtanh.f32 %v2278_v37  ;;  %v3737_v51 = vmul.f32 -1.442695, %v2278_v37 }
0x2016   :  { %4329 = vpow2.f32 %v3737_v51 }
0x201e   :  { %v4328_v30 = vpop.eup %4327 }
0x201f   :  { %2291 = vrot.lane.b32.xlu1 %v4328_v30, %s4402_s26 }
0x2020   :  { %v4330_v52 = vpop.eup %4329 }
0x2021   :  { %v2282_v56 = vadd.f32 1.0, %v4330_v52 }
0x2023   :  { %4331 = vrcp.f32 %v2282_v56 }
0x202d   :  { %v4332_v8 = vpop.eup %4331 }
0x202e   :  { %v2289_v58 = vmul.f32 %v4332_v8, %v2287_v57 }
0x2091   :  { %v2292_v5 = vpop.permute.xlu1 %2291 }
0x2092   :  { %v2294_v28 = vmul.f32 %v4332_v8, %v2292_v5 }
0x2094   :  { %2296 = vrot.lane.b32.xlu1 %v2294_v28, %s4403_s13 }
0x2106   :  { %v2297_v20 = vpop.permute.xlu1 %2296 }
0x2107   :  { %v5086_v59 = vadd.f32 %v2297_v20, %v2289_v58 }
0x2109   :  { %4333 = vtanh.f32 %v5086_v59 }
0x2113   :  { %v4334_v27 = vpop.eup %4333 }
0x2114   :  { %2302 = vrot.lane.b32.xlu1 %v4334_v27, %s4402_s26 }
0x2186   :  { %v2303_v61 = vpop.permute.xlu1 %2302 }
0x2187   :  { %v2305_v62 = vmul.f32 %v4332_v8, %v2303_v61 }
0x2189   :  { %2307 = vrot.lane.b32.xlu1 %v2305_v62, %s4403_s13 }
0x21fb   :  { %v2308_v63 = vpop.permute.xlu1 %2307 }
0x21fc   :  { %3988 = vmatmul.mubr.msk.f32.vlgmr.msra.gmra.mrb[16].mxu1 %vm59_vm0, %v2308_v63  ;;  %3739 = vmatmul.mubr.msk.f32.vlgmr.msra.gmra.mrb[18].mxu0 %vm59_vm0, %v2308_v63 }
0x21fd   :  { %4186 = vmatpush3.bf16.msra.mxu1 %v4672_v15  ;;  %3998 = vmatprep.mubr.msk.f32.mxu1 %vm4398_vm1, %v4399_v4 }
0x21fe   :  { %4187 = vmatprep.subr.bf16.mxu1 %v4397_v0  ;;  %4192 = vmatpush3.bf16.msra.mxu0 %v4735_v13 }
0x21ff   :  { %4193 = vmatprep.subr.bf16.mxu0 %v4397_v0  ;;  %4009 = vmatprep.mubr.msk.f32.mxu0 %vm4398_vm1, %v4399_v4 }
0x2201   :  { %4189 = vmatpush3.bf16.msra.mxu1 %v4682_v19 }
0x2202   :  { %4197 = vmatprep.subr.bf16.mxu1 %v4546_v24  ;;  %4195 = vmatpush3.bf16.msra.mxu0 %v4741_v18 }
0x2203   :  { %4204 = vmatprep.subr.bf16.mxu0 %v4397_v0 }
0x22cf   :  { %v5105_v49 = vpop.f32.mrb[16].mxu1  ;;  %v5107_v10 = vpop.f32.mrb[18].mxu0 }
0x22d0   :  { %v3989_v2 = vpop.f32.mrb[17].mxu1  ;;  %v2449_v3 = vpop.f32.mrb[19].mxu0 }
0x22d1   :  { %v2453_v11 = vadd.f32 %v5015_v6, %v2449_v3 }
0x22d3   :  { %v2461_v12 = vrot.slane %v2453_v11, %v4618_v9 }
0x22d5   :  { %v2462_v50 = vcombine.high %v2461_v12, %v2461_v12  ;;  %v2469_v22 = vrot.slane %v2461_v12, %v4618_v9 }
0x22d7   :  { %v2476_v60 = vrot.slane %v2462_v50, %v4618_v9  ;;  %v2480_v23 = vrot.slane %v2469_v22, %v4625_v14 }
0x22d9   :  { %v2484_v7 = vrot.slane %v2476_v60, %v4625_v14  ;;  %v2487_v26 = vadd.f32 %v2480_v23, %v4628_v17 }
0x22db   :  { %v2488_v29 = vadd.f32 %v2484_v7, %v4633_v21  ;;  %4335 = vtanh.f32 %v2487_v26 }
0x22dd   :  { %4337 = vtanh.f32 %v2488_v29 }
0x22e5   :  { %v4336_v31 = vpop.eup %4335 }
0x22e6   :  { %v2491_v32 = vmul.f32 %v5033_v16, %v4336_v31 }
0x22e7   :  { %v4338_v34 = vpop.eup %4337 }
0x22e8   :  { %v2493_v36 = vsel %vm59_vm0, %v2491_v32, 0.0  ;;  %v2492_v54 = vmul.f32 %v5033_v16, %v4338_v34  ;;  %v3657_v32 = vrot.slane %v5058_v25, %v4648_v35 }
0x22e9   :  { %2494 = vadd.xlane.f32.xlu0 %v2493_v36 }
0x22ea   :  { %v2496_v38 = vsel %vm59_vm0, %v2492_v54, 0.0 }
0x22eb   :  { %2497 = vadd.xlane.f32.xlu1 %v2496_v38  ;;  %v3653_v38 = vrot.slane %v5053_v1, %v4648_v35 }
0x2376   :  { %v2495_v42 = vpop.xlane.xlu0 %2494 }
0x2377   :  { %v2499_v44 = vadd.f32 %v2495_v42, %v4646_v33 }
0x2378   :  { %v2498_v46 = vpop.xlane.xlu1 %2497 }
0x2379   :  { %v2500_v48 = vadd.f32 %v2498_v46, %v4646_v33  ;;  %v2506_v37 = vrot.slane %v2499_v44, %v4648_v35 }
0x237b   :  { %v2510_v30 = vrot.slane %v2500_v48, %v4648_v35 }
0x237d   :  { %v2511_v51 = vsel %vm90_vm2, %v2510_v30, %v2506_v37  ;;  %v3658_v37 = vsel %vm90_vm2, %v3657_v32, %v3653_v38 }
0x237e   :  { %v2513_v52 = vsel %vm524_vm3, %v2511_v51, -inf }
0x237f   :  { %2514 = vmax.xlane.f32.xlu0 %v2513_v52 }
0x240c   :  { %v2515_v56 = vpop.xlane.xlu0 %2514 }
0x240d   :  { %v2520_v8 = vrot.slane %v2515_v56, %v4625_v14  ;;  %v2524_v5 = vrot.slane %v2515_v56, %v4656_v45 }
0x240f   :  { %v2527_v28 = vsub.f32 %v2499_v44, %v2520_v8  ;;  %v2528_v57 = vsub.f32 %v2500_v48, %v2524_v5 }
0x2411   :  { %v2529_v58 = vmul.f32 1.442695, %v2527_v28  ;;  %v2531_v20 = vmul.f32 1.442695, %v2528_v57 }
0x2413   :  { %4339 = vpow2.f32 %v2529_v58 }
0x2414   :  { %4341 = vpow2.f32 %v2531_v20 }
0x241d   :  { %v4340_v27 = vpop.eup %4339 }
0x241e   :  { %2536 = vperm.xlu0 %4244, %v4340_v27   ;;  %v4342_v61 = vpop.eup %4341 }
0x2422   :  { %2539 = vperm.xlu0 %4244, %v4342_v61  }
0x249d   :  { %v2537_v62 = vpop.permute.xlu0 %2536 }
0x249e   :  { %v2544_v2 = vrot.slane %v2537_v62, %v4648_v35  ;;  %v2452_v62 = vadd.f32 %v5078_v43, %v5107_v10  ;;  %v2685_v10 = vrot.slane %v5086_v59, 6 }
0x24a1   :  { %v2540_v63 = vpop.permute.xlu0 %2539 }
0x24a2   :  { %v2548_v3 = vrot.slane %v2540_v63, %v4648_v35 }
0x24a4   :  { %v2549_v11 = vsel %vm90_vm2, %v2548_v3, %v2544_v2 }
0x24a5   :  { %v2551_v12 = vsel %vm524_vm3, %v2549_v11, 0.0  ;;  %v2674_v11 = vrot.slane %v2452_v62, 6 }
0x24a6   :  { %2552 = vadd.xlane.f32.xlu0 %v2551_v12 }
0x2533   :  { %v2553_v50 = vpop.xlane.xlu0 %2552 }
0x2534   :  { %4343 = vrcp.f32 %v2553_v50 }
0x253e   :  { %v4344_v22 = vpop.eup %4343 }
0x253f   :  { %v2559_v60 = vrot.slane %v4344_v22, %v4625_v14  ;;  %v2563_v7 = vrot.slane %v4344_v22, %v4656_v45 }
0x2541   :  { %v2566_v23 = vmul.f32 %v4340_v27, %v2559_v60  ;;  %v2567_v26 = vmul.f32 %v4342_v61, %v2563_v7 }
0x2543   :  { %2570 = vperm.xlu1 %4243, %v2566_v23  }
0x2547   :  { %2575 = vperm.xlu1 %4243, %v2567_v26  }
0x25c2   :  { %v2571_v29 = vpop.permute.xlu1 %2570 }
0x25c3   :  { %v2578_v31 = vmul.f32 %v4957_v55, %v2571_v29  ;;  %v3663_v42 = vrot.slane %v2571_v29, %v4648_v35 }
0x25c5   :  { %v2580_v34 = vsel %vm59_vm0, %v2578_v31, 0.0 }
0x25c6   :  { %v2581_v36 = vrot.slane %v2580_v34, 4  ;;  %v2576_v54 = vpop.permute.xlu1 %2575 }
0x25c7   :  { %v2579_v44 = vmul.f32 %v4965_v53, %v2576_v54  ;;  %v3667_v46 = vrot.slane %v2576_v54, %v4648_v35 }
0x25c8   :  { %v2582_v48 = vadd.f32 %v2581_v36, %v2580_v34 }
0x25c9   :  { %v2587_v30 = vsel %vm59_vm0, %v2579_v44, 0.0  ;;  %v3668_v25 = vsel %vm3625_vm4, %v3667_v46, %v3663_v42 }
0x25ca   :  { %v2583_v51 = vrot.slane %v2582_v48, 2  ;;  %v2588_v52 = vrot.slane %v2587_v30, 4  ;;  %v5148_v56 = vsel %vm3596_vm5, %v3658_v37, %v3668_v25  ;;  %v5187_v37 = vld [vmem:[%s5344_s11] ss:$0 sm:$0xff] }
0x25cc   :  { %v2584_v8 = vadd.f32 %v2583_v51, %v2582_v48  ;;  %v2589_v1 = vadd.f32 %v2588_v52, %v2587_v30 }
0x25ce   :  { %v2590_v5 = vrot.slane %v2589_v1, 2  ;;  %v2585_v28 = vrot.slane %v2584_v8, 1 }
0x25d0   :  { %v2591_v57 = vadd.f32 %v2590_v5, %v2589_v1  ;;  %v2586_v20 = vadd.f32 %v2585_v28, %v2584_v8 }
0x25d2   :  { %v2592_v58 = vrot.slane %v2591_v57, 1 }
0x25d4   :  { %v2593_v27 = vadd.f32 %v2592_v58, %v2591_v57 }
0x25d6   :  { %v2596_v61 = vsel %vm90_vm2, %v2593_v27, %v2586_v20 }
0x25d7   :  { %3999 = vmatmul.mubr.msk.f32.vlgmr.msra.gmra.mrb[18].mxu1 %vm59_vm0, %v2596_v61 }
0x25d8   :  { %4199 = vmatpush1.bf16.msra.mxu1 %v4561_v39  ;;  %2844 = vmatprep.mubr.f32.mxu1 %v4399_v4 }
0x25d9   :  { %4201 = vmatprep.subr.bf16.mxu1 %v4563_v40 }
0x25dc   :  { %4203 = vmatpush1.bf16.msra.mxu1 %v4585_v47 }
0x25dd   :  { %4210 = vmatprep.subr.bf16.mxu1 %v4397_v0 }
0x26aa   :  { %v2665_v63 = vpop.f32.mrb[18].mxu1 }
0x26ab   :  { %v2670_v2 = vrot.slane %v2665_v63, 6  ;;  %v4000_v3 = vpop.f32.mrb[19].mxu1 }
0x26ad   :  { %v2672_v12 = vadd.f32 %v2670_v2, %v5073_v41 }
0x26af   :  { %v2676_v50 = vadd.f32 %v2674_v11, %v2672_v12 }
0x26b1   :  { %4345 = vtanh.f32 %v2676_v50  ;;  %v3741_v60 = vmul.f32 -1.442695, %v2676_v50 }
0x26b3   :  { %4347 = vpow2.f32 %v3741_v60 }
0x26bb   :  { %v4346_v22 = vpop.eup %4345 }
0x26bc   :  { %2689 = vrot.lane.b32.xlu1 %v4346_v22, %s4402_s26 }
0x26bd   :  { %v4348_v23 = vpop.eup %4347 }
0x26be   :  { %v2680_v7 = vadd.f32 1.0, %v4348_v23 }
0x26c0   :  { %4349 = vrcp.f32 %v2680_v7 }
0x26ca   :  { %v4350_v26 = vpop.eup %4349 }
0x26cb   :  { %v2687_v32 = vmul.f32 %v4350_v26, %v2685_v10 }
0x272e   :  { %v2690_v29 = vpop.permute.xlu1 %2689 }
0x272f   :  { %v2692_v31 = vmul.f32 %v4350_v26, %v2690_v29 }
0x2731   :  { %2694 = vrot.lane.b32.xlu1 %v2692_v31, %s4403_s13 }
0x27a3   :  { %v2695_v34 = vpop.permute.xlu1 %2694 }
0x27a4   :  { %v5163_v36 = vadd.f32 %v2695_v34, %v2687_v32 }
0x27a6   :  { %4351 = vtanh.f32 %v5163_v36 }
0x27b0   :  { %v4352_v54 = vpop.eup %4351 }
0x27b1   :  { %2700 = vrot.lane.b32.xlu0 %v4352_v54, %s4402_s26 }
0x2823   :  { %v2701_v38 = vpop.permute.xlu0 %2700 }
0x2824   :  { %v2703_v42 = vmul.f32 %v4350_v26, %v2701_v38 }
0x2826   :  { %v2705_v44 = vrot.slane %v2703_v42, 2 }
0x2828   :  { %2706 = vrot.lane.b32.xlu1 %v2705_v44, %s4403_s13 }
0x289a   :  { %v2707_v46 = vpop.permute.xlu1 %2706 }
0x289b   :  { %4010 = vmatmul.mubr.msk.f32.vlgmr.msra.gmra.mrb[20].mxu0 %vm59_vm0, %v2707_v46  ;;  %3743 = vmatmul.mubr.msk.f32.vlgmr.msra.gmra.mrb[20].mxu1 %vm59_vm0, %v2707_v46 }
0x289c   :  { %4206 = vmatpush3.bf16.msra.mxu0 %v4672_v15  ;;  %4020 = vmatprep.mubr.msk.f32.mxu0 %vm4398_vm1, %v4399_v4 }
0x289d   :  { %4207 = vmatprep.subr.bf16.mxu0 %v4397_v0  ;;  %4212 = vmatpush3.bf16.msra.mxu1 %v4735_v13 }
0x289e   :  { %4213 = vmatprep.subr.bf16.mxu1 %v4397_v0  ;;  %4031 = vmatprep.mubr.msk.f32.mxu1 %vm4398_vm1, %v4399_v4 }
0x28a0   :  { %4209 = vmatpush3.bf16.msra.mxu0 %v4682_v19 }
0x28a1   :  { %4217 = vmatprep.subr.bf16.mxu0 %v4546_v24  ;;  %4215 = vmatpush3.bf16.msra.mxu1 %v4741_v18  ;;  %v2378_v24 = vadd.f32 %v5187_v37, %v5105_v49 }
0x28a2   :  { %4224 = vmatprep.subr.bf16.mxu1 %v4397_v0 }
0x296e   :  { %v2776_v59 = vpop.f32.mrb[20].mxu0  ;;  %v5182_v48 = vpop.f32.mrb[20].mxu1 }
0x296f   :  { %v2777_v30 = vadd.f32 %v5187_v37, %v2776_v59  ;;  %v4011_v25 = vpop.f32.mrb[21].mxu0  ;;  %v2848_v51 = vpop.f32.mrb[21].mxu1 }
0x2970   :  { %v2852_v52 = vadd.f32 %v5015_v6, %v2848_v51 }
0x2971   :  { %v3588_v8 = vrot.slane %v2777_v30, 6 }
0x2972   :  { %v2860_v1 = vrot.slane %v2852_v52, %v4618_v9 }
0x2973   :  { %v5195_v5 = vsel %vm3596_vm5, %v2378_v24, %v3588_v8 }
0x2974   :  { %v2861_v28 = vcombine.high %v2860_v1, %v2860_v1  ;;  %v2868_v57 = vrot.slane %v2860_v1, %v4618_v9 }
0x2976   :  { %v2875_v58 = vrot.slane %v2861_v28, %v4618_v9  ;;  %v2879_v20 = vrot.slane %v2868_v57, %v4625_v14 }
0x2978   :  { %v2883_v27 = vrot.slane %v2875_v58, %v4625_v14  ;;  %v2886_v61 = vadd.f32 %v2879_v20, %v4628_v17 }
0x297a   :  { %v2887_v62 = vadd.f32 %v2883_v27, %v4633_v21  ;;  %4353 = vtanh.f32 %v2886_v61 }
0x297c   :  { %4355 = vtanh.f32 %v2887_v62 }
0x2984   :  { %v4354_v49 = vpop.eup %4353 }
0x2985   :  { %v2890_v63 = vmul.f32 %v5033_v16, %v4354_v49 }
0x2986   :  { %v4356_v2 = vpop.eup %4355 }
0x2987   :  { %v2892_v3 = vsel %vm59_vm0, %v2890_v63, 0.0  ;;  %v2891_v11 = vmul.f32 %v5033_v16, %v4356_v2 }
0x2988   :  { %2893 = vadd.xlane.f32.xlu1 %v2892_v3 }
0x2989   :  { %v2895_v12 = vsel %vm59_vm0, %v2891_v11, 0.0 }
0x298a   :  { %2896 = vadd.xlane.f32.xlu0 %v2895_v12 }
0x2a15   :  { %v2894_v50 = vpop.xlane.xlu1 %2893 }
0x2a16   :  { %v2898_v22 = vadd.f32 %v2894_v50, %v4646_v33 }
0x2a17   :  { %v2897_v60 = vpop.xlane.xlu0 %2896 }
0x2a18   :  { %v2899_v23 = vadd.f32 %v2897_v60, %v4646_v33  ;;  %v2905_v7 = vrot.slane %v2898_v22, %v4648_v35 }
0x2a1a   :  { %v2909_v26 = vrot.slane %v2899_v23, %v4648_v35 }
0x2a1c   :  { %v2910_v29 = vsel %vm90_vm2, %v2909_v26, %v2905_v7 }
0x2a1d   :  { %v2912_v31 = vsel %vm524_vm3, %v2910_v29, -inf }
0x2a1e   :  { %2913 = vmax.xlane.f32.xlu1 %v2912_v31 }
0x2aab   :  { %v2914_v10 = vpop.xlane.xlu1 %2913 }
0x2aac   :  { %v2919_v32 = vrot.slane %v2914_v10, %v4625_v14  ;;  %v2923_v34 = vrot.slane %v2914_v10, %v4656_v45 }
0x2aae   :  { %v2926_v54 = vsub.f32 %v2898_v22, %v2919_v32  ;;  %v2927_v38 = vsub.f32 %v2899_v23, %v2923_v34 }
0x2ab0   :  { %v2928_v42 = vmul.f32 1.442695, %v2926_v54  ;;  %v2930_v44 = vmul.f32 1.442695, %v2927_v38 }
0x2ab2   :  { %4357 = vpow2.f32 %v2928_v42 }
0x2ab3   :  { %4359 = vpow2.f32 %v2930_v44 }
0x2abc   :  { %v4358_v46 = vpop.eup %4357 }
0x2abd   :  { %v4360_v59 = vpop.eup %4359  ;;  %2935 = vperm.xlu1 %4243, %v4358_v46  }
0x2abe   :  { %2938 = vperm.xlu0 %4244, %v4360_v59  }
0x2b3c   :  { %v2936_v30 = vpop.permute.xlu1 %2935 }
0x2b3d   :  { %v2939_v25 = vpop.permute.xlu0 %2938  ;;  %v2943_v51 = vrot.slane %v2936_v30, %v4648_v35 }
0x2b3e   :  { %v2947_v52 = vrot.slane %v2939_v25, %v4648_v35 }
0x2b40   :  { %v2948_v24 = vsel %vm90_vm2, %v2947_v52, %v2943_v51 }
0x2b41   :  { %v2950_v8 = vsel %vm524_vm3, %v2948_v24, 0.0 }
0x2b42   :  { %2951 = vadd.xlane.f32.xlu1 %v2950_v8 }
0x2bcf   :  { %v2952_v1 = vpop.xlane.xlu1 %2951 }
0x2bd0   :  { %4361 = vrcp.f32 %v2952_v1 }
0x2bda   :  { %v4362_v28 = vpop.eup %4361 }
0x2bdb   :  { %v2958_v57 = vrot.slane %v4362_v28, %v4625_v14  ;;  %v2962_v20 = vrot.slane %v4362_v28, %v4656_v45 }
0x2bdd   :  { %v2965_v58 = vmul.f32 %v4358_v46, %v2958_v57  ;;  %v2966_v27 = vmul.f32 %v4360_v59, %v2962_v20 }
0x2bdf   :  { %2969 = vperm.xlu0 %4244, %v2965_v58  }
0x2be3   :  { %2974 = vperm.xlu0 %4244, %v2966_v27  }
0x2c5e   :  { %v2970_v61 = vpop.permute.xlu0 %2969 }
0x2c5f   :  { %v2977_v62 = vmul.f32 %v4957_v55, %v2970_v61  ;;  %v3673_v3 = vrot.slane %v2970_v61, %v4648_v35 }
0x2c61   :  { %v2979_v49 = vsel %vm59_vm0, %v2977_v62, 0.0 }
0x2c62   :  { %v2980_v63 = vrot.slane %v2979_v49, 4  ;;  %v2975_v2 = vpop.permute.xlu0 %2974 }
0x2c63   :  { %v2978_v11 = vmul.f32 %v4965_v53, %v2975_v2  ;;  %v3677_v12 = vrot.slane %v2975_v2, %v4648_v35 }
0x2c64   :  { %v2981_v50 = vadd.f32 %v2980_v63, %v2979_v49 }
0x2c65   :  { %v2986_v22 = vsel %vm59_vm0, %v2978_v11, 0.0  ;;  %v3678_v60 = vsel %vm3636_vm6, %v3677_v12, %v3673_v3 }
0x2c66   :  { %v2982_v23 = vrot.slane %v2981_v50, 2  ;;  %v2987_v7 = vrot.slane %v2986_v22, 4  ;;  %v5230_v55 = vsel %vm3598_vm7, %v5148_v56, %v3678_v60  ;;  %v2851_v56 = vadd.f32 %v5078_v43, %v5182_v48 }
0x2c67   :  { %v3084_v48 = vrot.slane %v5163_v36, 6 }
0x2c68   :  { %v2983_v26 = vadd.f32 %v2982_v23, %v2981_v50  ;;  %v2988_v29 = vadd.f32 %v2987_v7, %v2986_v22  ;;  %v3073_v59 = vrot.slane %v2851_v56, 4 }
0x2c6a   :  { %v2989_v31 = vrot.slane %v2988_v29, 2  ;;  %v2984_v10 = vrot.slane %v2983_v26, 1 }
0x2c6c   :  { %v2990_v32 = vadd.f32 %v2989_v31, %v2988_v29  ;;  %v2985_v53 = vadd.f32 %v2984_v10, %v2983_v26 }
0x2c6e   :  { %v2991_v34 = vrot.slane %v2990_v32, 1 }
0x2c70   :  { %v2992_v54 = vadd.f32 %v2991_v34, %v2990_v32 }
0x2c72   :  { %v2995_v38 = vsel %vm90_vm2, %v2992_v54, %v2985_v53 }
0x2c73   :  { %4021 = vmatmul.mubr.msk.f32.vlgmr.msra.gmra.mrb[22].mxu0 %vm59_vm0, %v2995_v38 }
0x2c74   :  { %4219 = vmatpush1.bf16.msra.mxu0 %v4561_v39  ;;  %3243 = vmatprep.mubr.f32.mxu0 %v4399_v4 }
0x2c75   :  { %4221 = vmatprep.subr.bf16.mxu0 %v4563_v40 }
0x2c78   :  { %4223 = vmatpush1.bf16.msra.mxu0 %v4585_v47 }
0x2c79   :  { %4230 = vmatprep.subr.bf16.mxu0 %v4397_v0 }
0x2d46   :  { %v3064_v42 = vpop.f32.mrb[22].mxu0 }
0x2d47   :  { %v3069_v44 = vrot.slane %v3064_v42, 4  ;;  %v4022_v46 = vpop.f32.mrb[23].mxu0 }
0x2d49   :  { %v3071_v30 = vadd.f32 %v3069_v44, %v5073_v41 }
0x2d4b   :  { %v3075_v25 = vadd.f32 %v3073_v59, %v3071_v30 }
0x2d4d   :  { %4363 = vtanh.f32 %v3075_v25  ;;  %v3745_v51 = vmul.f32 -1.442695, %v3075_v25 }
0x2d4f   :  { %4365 = vpow2.f32 %v3745_v51 }
0x2d57   :  { %v4364_v39 = vpop.eup %4363 }
0x2d58   :  { %3088 = vrot.lane.b32.xlu0 %v4364_v39, %s4402_s26 }
0x2d59   :  { %v4366_v40 = vpop.eup %4365 }
0x2d5a   :  { %v3079_v47 = vadd.f32 1.0, %v4366_v40 }
0x2d5c   :  { %4367 = vrcp.f32 %v3079_v47 }
0x2d66   :  { %v4368_v52 = vpop.eup %4367 }
0x2d67   :  { %v3086_v1 = vmul.f32 %v4368_v52, %v3084_v48 }
0x2dca   :  { %v3089_v24 = vpop.permute.xlu0 %3088 }
0x2dcb   :  { %v3091_v8 = vmul.f32 %v4368_v52, %v3089_v24 }
0x2dcd   :  { %3093 = vrot.lane.b32.xlu0 %v3091_v8, %s4403_s13 }
0x2e3f   :  { %v3094_v28 = vpop.permute.xlu0 %3093 }
0x2e40   :  { %v5245_v57 = vadd.f32 %v3094_v28, %v3086_v1 }
0x2e42   :  { %4369 = vtanh.f32 %v5245_v57 }
0x2e4c   :  { %v4370_v58 = vpop.eup %4369 }
0x2e4d   :  { %3099 = vrot.lane.b32.xlu0 %v4370_v58, %s4402_s26 }
0x2ebf   :  { %v3100_v20 = vpop.permute.xlu0 %3099 }
0x2ec0   :  { %v3102_v27 = vmul.f32 %v4368_v52, %v3100_v20  ;;  %v4395_v20 = vld [vmem:[%s5352_s20] sm:$0xff] }
0x2ec2   :  { %v3104_v61 = vrot.slane %v3102_v27, 4 }
0x2ec4   :  { %3105 = vrot.lane.b32.xlu0 %v3104_v61, %s4403_s13 }
0x2f36   :  { %v3106_v62 = vpop.permute.xlu0 %3105 }
0x2f37   :  { %4032 = vmatmul.mubr.msk.f32.vlgmr.msra.gmra.mrb[22].mxu1 %vm59_vm0, %v3106_v62  ;;  %3747 = vmatmul.mubr.msk.f32.vlgmr.msra.gmra.mrb[24].mxu0 %vm59_vm0, %v3106_v62 }
0x2f38   :  { %4226 = vmatpush3.bf16.msra.mxu1 %v4672_v15  ;;  %4042 = vmatprep.mubr.msk.f32.mxu1 %vm4398_vm1, %v4399_v4 }
0x2f39   :  { %4227 = vmatprep.subr.bf16.mxu1 %v4397_v0  ;;  %4232 = vmatpush3.bf16.msra.mxu0 %v4735_v13 }
0x2f3a   :  { %4233 = vmatprep.subr.bf16.mxu0 %v4397_v0  ;;  %4053 = vmatprep.mubr.msk.f32.mxu0 %vm4398_vm1, %v4399_v4 }
0x2f3c   :  { %4229 = vmatpush3.bf16.msra.mxu1 %v4682_v19 }
0x2f3d   :  { %4235 = vmatpush3.bf16.msra.mxu0 %v4741_v18 }
0x300a   :  { %v3175_v36 = vpop.f32.mrb[22].mxu1  ;;  %v5262_v49 = vpop.f32.mrb[24].mxu0 }
0x300b   :  { %v3176_v15 = vadd.f32 %v5187_v37, %v3175_v36  ;;  %v4033_v63 = vpop.f32.mrb[23].mxu1  ;;  %v3247_v2 = vpop.f32.mrb[25].mxu0 }
0x300c   :  { %v3251_v3 = vadd.f32 %v5015_v6, %v3247_v2 }
0x300d   :  { %v3591_v11 = vrot.slane %v3176_v15, 4 }
0x300e   :  { %v3259_v13 = vrot.slane %v3251_v3, %v4618_v9 }
0x300f   :  { %v5269_v0 = vsel %vm3598_vm7, %v5195_v5, %v3591_v11 }
0x3010   :  { %v3260_v4 = vcombine.high %v3259_v13, %v3259_v13  ;;  %v3267_v19 = vrot.slane %v3259_v13, %v4618_v9 }
0x3012   :  { %v3274_v18 = vrot.slane %v3260_v4, %v4618_v9  ;;  %v3278_v12 = vrot.slane %v3267_v19, %v4625_v14 }
0x3014   :  { %v3282_v50 = vrot.slane %v3274_v18, %v4625_v14  ;;  %v3285_v22 = vadd.f32 %v3278_v12, %v4628_v17 }
0x3016   :  { %v3286_v6 = vadd.f32 %v3282_v50, %v4633_v21  ;;  %4371 = vtanh.f32 %v3285_v22 }
0x3018   :  { %4373 = vtanh.f32 %v3286_v6 }
0x3020   :  { %v4372_v60 = vpop.eup %4371 }
0x3021   :  { %v3289_v23 = vmul.f32 %v5033_v16, %v4372_v60 }
0x3022   :  { %v4374_v5 = vpop.eup %4373 }
0x3023   :  { %v3291_v7 = vsel %vm59_vm0, %v3289_v23, 0.0  ;;  %v3290_v26 = vmul.f32 %v5033_v16, %v4374_v5 }
0x3024   :  { %3292 = vadd.xlane.f32.xlu0 %v3291_v7 }
0x3025   :  { %v3294_v9 = vsel %vm59_vm0, %v3290_v26, 0.0 }
0x3026   :  { %3295 = vadd.xlane.f32.xlu1 %v3294_v9 }
0x30b1   :  { %v3293_v29 = vpop.xlane.xlu0 %3292 }
0x30b2   :  { %v3297_v31 = vadd.f32 %v3293_v29, %v4646_v33 }
0x30b3   :  { %v3296_v17 = vpop.xlane.xlu1 %3295 }
0x30b4   :  { %v3298_v21 = vadd.f32 %v3296_v17, %v4646_v33  ;;  %v3304_v10 = vrot.slane %v3297_v31, %v4648_v35 }
0x30b6   :  { %v3308_v32 = vrot.slane %v3298_v21, %v4648_v35 }
0x30b8   :  { %v3309_v34 = vsel %vm90_vm2, %v3308_v32, %v3304_v10 }
0x30b9   :  { %v3311_v53 = vsel %vm524_vm3, %v3309_v34, -inf }
0x30ba   :  { %3312 = vmax.xlane.f32.xlu1 %v3311_v53 }
0x3147   :  { %v3313_v16 = vpop.xlane.xlu1 %3312 }
0x3148   :  { %v3318_v54 = vrot.slane %v3313_v16, %v4625_v14  ;;  %v3322_v38 = vrot.slane %v3313_v16, %v4656_v45 }
0x314a   :  { %v3325_v56 = vsub.f32 %v3297_v31, %v3318_v54  ;;  %v3326_v42 = vsub.f32 %v3298_v21, %v3322_v38 }
0x314c   :  { %v3327_v44 = vmul.f32 1.442695, %v3325_v56  ;;  %v3329_v46 = vmul.f32 1.442695, %v3326_v42 }
0x314e   :  { %4375 = vpow2.f32 %v3327_v44 }
0x314f   :  { %4377 = vpow2.f32 %v3329_v46 }
0x3158   :  { %v4376_v33 = vpop.eup %4375 }
0x3159   :  { %3334 = vperm.xlu1 %4243, %v4376_v33   ;;  %v4378_v59 = vpop.eup %4377 }
0x315d   :  { %3337 = vperm.xlu1 %4243, %v4378_v59  }
0x31d8   :  { %v3335_v30 = vpop.permute.xlu1 %3334 }
0x31d9   :  { %v3342_v39 = vrot.slane %v3335_v30, %v4648_v35 }
0x31dc   :  { %v3338_v25 = vpop.permute.xlu1 %3337 }
0x31dd   :  { %v3346_v51 = vrot.slane %v3338_v25, %v4648_v35 }
0x31df   :  { %v3347_v40 = vsel %vm90_vm2, %v3346_v51, %v3342_v39 }
0x31e0   :  { %v3349_v47 = vsel %vm524_vm3, %v3347_v40, 0.0 }
0x31e1   :  { %3350 = vadd.xlane.f32.xlu1 %v3349_v47 }
0x326e   :  { %v3351_v52 = vpop.xlane.xlu1 %3350 }
0x326f   :  { %4379 = vrcp.f32 %v3351_v52 }
0x3279   :  { %v4380_v24 = vpop.eup %4379 }
0x327a   :  { %v3357_v8 = vrot.slane %v4380_v24, %v4625_v14  ;;  %v3361_v1 = vrot.slane %v4380_v24, %v4656_v45  ;;  %v4396_v14 = vld [vmem:[%s5352_s20 + $0x8] sm:$0xff] }
0x327c   :  { %v3364_v48 = vmul.f32 %v4376_v33, %v3357_v8  ;;  %v3365_v28 = vmul.f32 %v4378_v59, %v3361_v1 }
0x327e   :  { %3368 = vperm.xlu0 %4244, %v3364_v48  }
0x3282   :  { %3373 = vperm.xlu0 %4244, %v3365_v28  }
0x32fd   :  { %v3369_v58 = vpop.permute.xlu0 %3368 }
0x32fe   :  { %v3376_v27 = vmul.f32 %v4395_v20, %v3369_v58  ;;  %v3683_v15 = vrot.slane %v3369_v58, %v4648_v35 }
0x3300   :  { %v3378_v61 = vsel %vm59_vm0, %v3376_v27, 0.0 }
0x3301   :  { %v3379_v62 = vrot.slane %v3378_v61, 4  ;;  %v3374_v36 = vpop.permute.xlu0 %3373 }
0x3302   :  { %v3377_v45 = vmul.f32 %v4396_v14, %v3374_v36  ;;  %v3687_v63 = vrot.slane %v3374_v36, %v4648_v35 }
0x3303   :  { %v3380_v2 = vadd.f32 %v3379_v62, %v3378_v61 }
0x3304   :  { %v3385_v3 = vsel %vm59_vm0, %v3377_v45, 0.0  ;;  %v3688_v11 = vsel %vm3647_vm8, %v3687_v63, %v3683_v15 }
0x3305   :  { %v3381_v13 = vrot.slane %v3380_v2, 2  ;;  %v3386_v4 = vrot.slane %v3385_v3, 4  ;;  %v3695_v19 = vsel %vm3600_vm9, %v5230_v55, %v3688_v11  ;;  %v3250_v55 = vadd.f32 %v5078_v43, %v5262_v49 }
0x3306   :  { %3698 = vst.msk [vmem:[%s5345_s17 + $0x8] sm:$0xff] %vm3696_vm10, %v3695_v19  ;;  %v3483_v43 = vrot.slane %v5245_v57, 6 }
0x3307   :  { %v3382_v18 = vadd.f32 %v3381_v13, %v3380_v2  ;;  %v3387_v12 = vadd.f32 %v3386_v4, %v3385_v3  ;;  %v3472_v29 = vrot.slane %v3250_v55, 2 }
0x3309   :  { %v3388_v50 = vrot.slane %v3387_v12, 2  ;;  %v3383_v22 = vrot.slane %v3382_v18, 1 }
0x330b   :  { %v3389_v35 = vadd.f32 %v3388_v50, %v3387_v12  ;;  %v3384_v60 = vadd.f32 %v3383_v22, %v3382_v18 }
0x330d   :  { %v3390_v6 = vrot.slane %v3389_v35, 1 }
0x330f   :  { %v3391_v23 = vadd.f32 %v3390_v6, %v3389_v35 }
0x3311   :  { %v3394_v5 = vsel %vm90_vm2, %v3391_v23, %v3384_v60 }
0x3312   :  { %4043 = vmatmul.mubr.msk.f32.vlgmr.msra.gmra.mrb[24].mxu1 %vm59_vm0, %v3394_v5 }
0x33e5   :  { %v3463_v7 = vpop.f32.mrb[24].mxu1 }
0x33e6   :  { %v3468_v26 = vrot.slane %v3463_v7, 2  ;;  %v4044_v9 = vpop.f32.mrb[25].mxu1 }
0x33e8   :  { %v3470_v31 = vadd.f32 %v3468_v26, %v5073_v41 }
0x33ea   :  { %v3474_v17 = vadd.f32 %v3472_v29, %v3470_v31 }
0x33ec   :  { %4381 = vtanh.f32 %v3474_v17  ;;  %v3749_v10 = vmul.f32 -1.442695, %v3474_v17 }
0x33ee   :  { %4383 = vpow2.f32 %v3749_v10 }
0x33f6   :  { %v4382_v21 = vpop.eup %4381 }
0x33f7   :  { %3487 = vrot.lane.b32.xlu0 %v4382_v21, %s4402_s26 }
0x33f8   :  { %v4384_v32 = vpop.eup %4383 }
0x33f9   :  { %v3478_v34 = vadd.f32 1.0, %v4384_v32 }
0x33fb   :  { %4385 = vrcp.f32 %v3478_v34 }
0x3405   :  { %v4386_v53 = vpop.eup %4385 }
0x3406   :  { %v3485_v49 = vmul.f32 %v4386_v53, %v3483_v43 }
0x3469   :  { %v3488_v16 = vpop.permute.xlu0 %3487 }
0x346a   :  { %v3490_v54 = vmul.f32 %v4386_v53, %v3488_v16 }
0x346c   :  { %3492 = vrot.lane.b32.xlu0 %v3490_v54, %s4403_s13 }
0x34de   :  { %v3493_v38 = vpop.permute.xlu0 %3492 }
0x34df   :  { %v3495_v41 = vadd.f32 %v3493_v38, %v3485_v49 }
0x34e1   :  { %4387 = vtanh.f32 %v3495_v41 }
0x34eb   :  { %v4388_v56 = vpop.eup %4387 }
0x34ec   :  { %3498 = vrot.lane.b32.xlu0 %v4388_v56, %s4402_s26 }
0x355e   :  { %v3499_v42 = vpop.permute.xlu0 %3498 }
0x355f   :  { %v3501_v44 = vmul.f32 %v4386_v53, %v3499_v42 }
0x3561   :  { %v3503_v46 = vrot.slane %v3501_v44, 6 }
0x3563   :  { %3504 = vrot.lane.b32.xlu1 %v3503_v46, %s4403_s13 }
0x35d5   :  { %v3505_v33 = vpop.permute.xlu1 %3504 }
0x35d6   :  { %4054 = vmatmul.mubr.msk.f32.vlgmr.msra.gmra.mrb[26].mxu0 %vm59_vm0, %v3505_v33 }
0x36a9   :  { %v3574_v59 = vpop.f32.mrb[26].mxu0 }
0x36aa   :  { %v3575_v30 = vadd.f32 %v5187_v37, %v3574_v59  ;;  %v4055_v25 = vpop.f32.mrb[27].mxu0 }
0x36ac   :  { %v3594_v57 = vrot.slane %v3575_v30, 2 }
0x36ae   :  { %v3604_v39 = vsel %vm3600_vm9, %v5269_v0, %v3594_v57 }
0x36af   :  { %3606 = vst [vmem:[%s5346_s16 + $0x8] sm:$0xff] %v3604_v39 }

</bundles_post_ra>
